<compile_context>
chip_gen: v6e
topology: v6e:2x2x1
jax: 0.10.0
libtpu: 0.0.40
codegen_flags: <defaults>
</compile_context>

<pallas_src>
import math
import numpy as np
import jax
import jax.numpy as jnp
from jax.experimental import pallas as pl
from jax.experimental.pallas import tpu as pltpu


# ----------------------------- glue helpers --------------------------------
def window_partition(x, ws):
    # x: (B, H, W, C) -> (B*nW, ws*ws, C)   (batch-major window order)
    B, H, W, C = x.shape
    x = x.reshape(B, H // ws, ws, W // ws, ws, C)
    return x.transpose(0, 1, 3, 2, 4, 5).reshape(-1, ws * ws, C)


def window_reverse(win, ws, H, W, B):
    # win: (B*nW, ws*ws, C) -> (B, H, W, C)
    C = win.shape[-1]
    x = win.reshape(B, H // ws, W // ws, ws, ws, C)
    return x.transpose(0, 1, 3, 2, 4, 5).reshape(B, H, W, C)


def window_partition_np(x, ws):
    B, H, W, C = x.shape
    x = x.reshape(B, H // ws, ws, W // ws, ws, C)
    return x.transpose(0, 1, 3, 2, 4, 5).reshape(-1, ws, ws, C)


def make_attn_mask(H, W, ws, shift, N, nW):
    """Shift-window attention mask, exactly as in SwinTransformerBlock.__init__."""
    if shift == 0:
        return np.zeros((nW, N, N), dtype=np.float32)
    img_mask = np.zeros((1, H, W, 1), dtype=np.float32)
    h_slices = (slice(0, -ws), slice(-ws, -shift), slice(-shift, None))
    w_slices = (slice(0, -ws), slice(-ws, -shift), slice(-shift, None))
    cnt = 0
    for h in h_slices:
        for w in w_slices:
            img_mask[:, h, w, :] = cnt
            cnt += 1
    mask_windows = window_partition_np(img_mask, ws).reshape(-1, ws * ws)
    am = mask_windows[:, None, :] - mask_windows[:, :, None]
    am = np.where(am != 0, -100.0, 0.0).astype(np.float32)
    return am  # (nW, N, N)


def make_relative_position_index(ws):
    coords = np.stack(np.meshgrid(np.arange(ws), np.arange(ws), indexing="ij"))  # (2,ws,ws)
    coords_flatten = coords.reshape(2, -1)                                        # (2, N)
    rel = coords_flatten[:, :, None] - coords_flatten[:, None, :]                 # (2, N, N)
    rel = rel.transpose(1, 2, 0).astype(np.int64)                                 # (N, N, 2)
    rel[:, :, 0] += ws - 1
    rel[:, :, 1] += ws - 1
    rel[:, :, 0] *= 2 * ws - 1
    return rel.sum(-1)                                                            # (N, N)


# ----------------------------- fused Pallas block ---------------------------
def fused_swin_block_pallas(xw, biasmask, p, num_heads, nW, N):
    """One full Swin block on window-permuted tokens.

    xw:       (B, nW*N, C)  tokens already rolled + window-partitioned,
                            windows contiguous per batch element.
    biasmask: (heads, nW, N, N)  relative-position bias + shift mask.
    returns   (B, nW*N, C)  = xw + attn(LN1(xw)) + MLP(LN2(...)), still permuted.
    """
    B, T, C = xw.shape
    heads = num_heads
    hd = C // heads
    hidden = p["w1"].shape[1]
    scale = hd ** (-0.5)
    inv_sqrt2 = 1.0 / math.sqrt(2.0)

    def kernel(x_ref, bm_ref, g1_ref, be1_ref, wqkv_ref, bqkv_ref, wp_ref, bp_ref,
               g2_ref, be2_ref, w1_ref, b1_ref, w2_ref, b2_ref, o_ref):
        x = x_ref[0]                                               # (T, C)

        # ---- LayerNorm 1 (eps=1e-5, biased variance, PyTorch semantics) ----
        mu = jnp.mean(x, axis=-1, keepdims=True)
        var = jnp.mean((x - mu) ** 2, axis=-1, keepdims=True)
        xn = (x - mu) * jax.lax.rsqrt(var + 1e-5) * g1_ref[0] + be1_ref[0]

        # ---- QKV projection for ALL windows at once: (T,C)@(C,3C), M=T ----
        qkv = jnp.dot(xn, wqkv_ref[...],
                      preferred_element_type=jnp.float32) + bqkv_ref[0]   # (T, 3C)
        qkv3 = qkv.reshape(nW, N, 3 * C)                                  # (nW, N, 3C)

        # ---- windowed multi-head attention, batched over windows ----
        wp = wp_ref[...]                                                  # (C, C)
        acc = jnp.zeros((T, C), jnp.float32)
        for h in range(heads):
            q = qkv3[:, :, h * hd:(h + 1) * hd] * scale                   # (nW, N, hd)
            k = qkv3[:, :, C + h * hd:C + (h + 1) * hd]                   # (nW, N, hd)
            v = qkv3[:, :, 2 * C + h * hd:2 * C + (h + 1) * hd]           # (nW, N, hd)
            s = jnp.einsum('wnd,wmd->wnm', q, k,
                           preferred_element_type=jnp.float32)            # (nW, N, N)
            s = s + bm_ref[h]                                             # bias + shift mask
            s = s - jnp.max(s, axis=-1, keepdims=True)
            pexp = jnp.exp(s)
            pexp = pexp * pl.reciprocal(jnp.sum(pexp, axis=-1, keepdims=True),
                                        approx=True)
            oh = jnp.einsum('wnm,wmd->wnd', pexp, v,
                            preferred_element_type=jnp.float32)           # (nW, N, hd)
            # output projection accumulated per head: avoids lane-dim concat
            acc = acc + jnp.dot(oh.reshape(T, hd), wp[h * hd:(h + 1) * hd, :],
                                preferred_element_type=jnp.float32)       # (T, C)

        x1 = x + acc + bp_ref[0]                                          # residual 1

        # ---- LayerNorm 2 + MLP (exact GELU) + residual 2 ----
        mu2 = jnp.mean(x1, axis=-1, keepdims=True)
        var2 = jnp.mean((x1 - mu2) ** 2, axis=-1, keepdims=True)
        xn2 = (x1 - mu2) * jax.lax.rsqrt(var2 + 1e-5) * g2_ref[0] + be2_ref[0]
        hmid = jnp.dot(xn2, w1_ref[...],
                       preferred_element_type=jnp.float32) + b1_ref[0]    # (T, hidden)
        hmid = 0.5 * hmid * (1.0 + jax.lax.erf(hmid * inv_sqrt2))
        y = jnp.dot(hmid, w2_ref[...],
                    preferred_element_type=jnp.float32) + b2_ref[0]       # (T, C)
        o_ref[0] = x1 + y

    return pl.pallas_call(
        kernel,
        out_shape=jax.ShapeDtypeStruct((B, T, C), jnp.float32),
        grid=(B,),
        in_specs=[
            pl.BlockSpec((1, T, C), lambda b: (b, 0, 0)),                 # tokens of batch b
            pl.BlockSpec((heads, nW, N, N), lambda b: (0, 0, 0, 0)),      # bias+mask (shared)
            pl.BlockSpec((1, C), lambda b: (0, 0)),
            pl.BlockSpec((1, C), lambda b: (0, 0)),
            pl.BlockSpec((C, 3 * C), lambda b: (0, 0)),
            pl.BlockSpec((1, 3 * C), lambda b: (0, 0)),
            pl.BlockSpec((C, C), lambda b: (0, 0)),
            pl.BlockSpec((1, C), lambda b: (0, 0)),
            pl.BlockSpec((1, C), lambda b: (0, 0)),
            pl.BlockSpec((1, C), lambda b: (0, 0)),
            pl.BlockSpec((C, hidden), lambda b: (0, 0)),
            pl.BlockSpec((1, hidden), lambda b: (0, 0)),
            pl.BlockSpec((hidden, C), lambda b: (0, 0)),
            pl.BlockSpec((1, C), lambda b: (0, 0)),
        ],
        out_specs=pl.BlockSpec((1, T, C), lambda b: (b, 0, 0)),
        compiler_params=pltpu.CompilerParams(dimension_semantics=("parallel",)),
    )(xw, biasmask, p["g1"], p["be1"], p["wqkv"], p["bqkv"], p["wproj"], p["bproj"],
      p["g2"], p["be2"], p["w1"], p["b1"], p["w2"], p["b2"])


# ----------------------------- Swin block / layer ---------------------------
def swin_block_forward(x, p, biasmask, H, W, ws, shift, num_heads):
    B, L, C = x.shape
    nW = (H // ws) * (W // ws)
    N = ws * ws
    # XLA glue: roll + window partition (pure token permutation).
    xhw = x.reshape(B, H, W, C)
    if shift > 0:
        xhw = jnp.roll(xhw, shift=(-shift, -shift), axis=(1, 2))
    xw = window_partition(xhw, ws)                 # (B*nW, N, C), batch-major
    xw = xw.reshape(B, nW * N, C)                  # windows contiguous per batch elem
    # Fused block (norm1 + attn + residual + norm2 + MLP + residual) in
    # permuted space — per-token ops commute with the token permutation.
    yw = fused_swin_block_pallas(xw, biasmask, p, num_heads, nW, N)
    # Inverse permutation back to (B, L, C).
    yw = yw.reshape(B * nW, N, C)
    yhw = window_reverse(yw, ws, H, W, B)
    if shift > 0:
        yhw = jnp.roll(yhw, shift=(shift, shift), axis=(1, 2))
    return yhw.reshape(B, L, C)


def basic_layer_forward(x, block_params, biasmasks, H, W, ws, shifts, num_heads):
    for p, bm, s in zip(block_params, biasmasks, shifts):
        x = swin_block_forward(x, p, bm, H, W, ws, s, num_heads)
    # downsample is None in this configuration
    return x


# ----------------------------- parameter init -------------------------------
def init_block_params(key, dim, hidden, num_heads, ws):
    ks = jax.random.split(key, 9)
    std = 0.02
    return {
        "g1": jnp.ones((1, dim), jnp.float32),
        "be1": jnp.zeros((1, dim), jnp.float32),
        # Linear weights stored pre-transposed (in_features, out_features).
        "wqkv": jax.random.normal(ks[0], (dim, 3 * dim), jnp.float32) * std,
        "bqkv": jax.random.normal(ks[1], (1, 3 * dim), jnp.float32) * std,
        "wproj": jax.random.normal(ks[2], (dim, dim), jnp.float32) * std,
        "bproj": jax.random.normal(ks[3], (1, dim), jnp.float32) * std,
        "rel_table": jax.random.normal(
            ks[4], ((2 * ws - 1) * (2 * ws - 1), num_heads), jnp.float32) * std,
        "g2": jnp.ones((1, dim), jnp.float32),
        "be2": jnp.zeros((1, dim), jnp.float32),
        "w1": jax.random.normal(ks[5], (dim, hidden), jnp.float32) * std,
        "b1": jax.random.normal(ks[6], (1, hidden), jnp.float32) * std,
        "w2": jax.random.normal(ks[7], (hidden, dim), jnp.float32) * std,
        "b2": jax.random.normal(ks[8], (1, dim), jnp.float32) * std,
    }


if __name__ == "__main__":
    # BasicLayer(dim=32, input_resolution=(8, 8), depth=2, num_heads=4,
    #            window_size=4, mlp_ratio=4.0, downsample=None)
    B, H, W, C = 2, 8, 8, 32
    ws = 4
    num_heads = 4
    depth = 2
    hidden = int(C * 4.0)
    N = ws * ws
    L = H * W
    nW = (H // ws) * (W // ws)
    shifts = [0 if i % 2 == 0 else ws // 2 for i in range(depth)]

    key = jax.random.PRNGKey(0)
    key, xkey = jax.random.split(key)
    x = jax.random.normal(xkey, (B, L, C), jnp.float32)

    block_keys = jax.random.split(key, depth)
    block_params = [init_block_params(block_keys[i], C, hidden, num_heads, ws)
                    for i in range(depth)]

    # Precompute (relative-position bias + shift mask) per block: (heads, nW, N, N)
    rel_index = jnp.asarray(make_relative_position_index(ws).reshape(-1))  # (N*N,)
    biasmasks = []
    for p, s in zip(block_params, shifts):
        rb = p["rel_table"][rel_index].reshape(N, N, num_heads).transpose(2, 0, 1)  # (heads,N,N)
        mask = jnp.asarray(make_attn_mask(H, W, ws, s, N, nW))                      # (nW,N,N)
        biasmasks.append((rb[:, None, :, :] + mask[None, :, :, :]).astype(jnp.float32))

    shifts_t = tuple(shifts)

    @jax.jit
    def layer_fn(xx, params, masks):
        return basic_layer_forward(xx, params, masks, H, W, ws, shifts_t, num_heads)

    out = layer_fn(x, block_params, biasmasks)
    out = jax.block_until_ready(out)
    assert out.shape == (B, L, C) and out.dtype == jnp.float32
    assert bool(jnp.all(jnp.isfinite(out)))
    print("KERNEL_OK")
</pallas_src>

<mosaic_0001>
module attributes {stable_mosaic.version = 11 : i64} {
  func.func @kernel(%arg0: i32, %arg1: memref<1x64x32xf32, #tpu.memory_space<vmem>>, %arg2: memref<4x4x16x16xf32, #tpu.memory_space<vmem>>, %arg3: memref<1x32xf32, #tpu.memory_space<vmem>>, %arg4: memref<1x32xf32, #tpu.memory_space<vmem>>, %arg5: memref<32x96xf32, #tpu.memory_space<vmem>>, %arg6: memref<1x96xf32, #tpu.memory_space<vmem>>, %arg7: memref<32x32xf32, #tpu.memory_space<vmem>>, %arg8: memref<1x32xf32, #tpu.memory_space<vmem>>, %arg9: memref<1x32xf32, #tpu.memory_space<vmem>>, %arg10: memref<1x32xf32, #tpu.memory_space<vmem>>, %arg11: memref<32x128xf32, #tpu.memory_space<vmem>>, %arg12: memref<1x128xf32, #tpu.memory_space<vmem>>, %arg13: memref<128x32xf32, #tpu.memory_space<vmem>>, %arg14: memref<1x32xf32, #tpu.memory_space<vmem>>, %arg15: memref<1x64x32xf32, #tpu.memory_space<vmem>>) attributes {dimension_semantics = [#tpu.dimension_semantics<parallel>], iteration_bounds = array<i64: 2>, scalar_prefetch = 0 : i64, scratch_operands = 0 : i64, tpu.core_type = #tpu.core_type<tc>, window_params = [{transform_indices = @transform_0, window_bounds = array<i64: 1, 64, 32>}, {pipeline_mode = #tpu.pipeline_mode<synchronous>, transform_indices = @transform_1, window_bounds = array<i64: 4, 4, 16, 16>}, {pipeline_mode = #tpu.pipeline_mode<synchronous>, transform_indices = @transform_2, window_bounds = array<i64: 1, 32>}, {pipeline_mode = #tpu.pipeline_mode<synchronous>, transform_indices = @transform_3, window_bounds = array<i64: 1, 32>}, {pipeline_mode = #tpu.pipeline_mode<synchronous>, transform_indices = @transform_4, window_bounds = array<i64: 32, 96>}, {pipeline_mode = #tpu.pipeline_mode<synchronous>, transform_indices = @transform_5, window_bounds = array<i64: 1, 96>}, {pipeline_mode = #tpu.pipeline_mode<synchronous>, transform_indices = @transform_6, window_bounds = array<i64: 32, 32>}, {pipeline_mode = #tpu.pipeline_mode<synchronous>, transform_indices = @transform_7, window_bounds = array<i64: 1, 32>}, {pipeline_mode = #tpu.pipeline_mode<synchronous>, transform_indices = @transform_8, window_bounds = array<i64: 1, 32>}, {pipeline_mode = #tpu.pipeline_mode<synchronous>, transform_indices = @transform_9, window_bounds = array<i64: 1, 32>}, {pipeline_mode = #tpu.pipeline_mode<synchronous>, transform_indices = @transform_10, window_bounds = array<i64: 32, 128>}, {pipeline_mode = #tpu.pipeline_mode<synchronous>, transform_indices = @transform_11, window_bounds = array<i64: 1, 128>}, {pipeline_mode = #tpu.pipeline_mode<synchronous>, transform_indices = @transform_12, window_bounds = array<i64: 128, 32>}, {pipeline_mode = #tpu.pipeline_mode<synchronous>, transform_indices = @transform_13, window_bounds = array<i64: 1, 32>}, {transform_indices = @transform_14, window_bounds = array<i64: 1, 64, 32>}]} {
    %c0 = arith.constant 0 : index
    %c0_0 = arith.constant 0 : index
    %c0_1 = arith.constant 0 : index
    %0 = vector.load %arg1[%c0, %c0_0, %c0_1] : memref<1x64x32xf32, #tpu.memory_space<vmem>>, vector<1x64x32xf32>
    %1 = vector.shape_cast %0 : vector<1x64x32xf32> to vector<64x32xf32>
    %cst = arith.constant dense<0.000000e+00> : vector<64xf32>
    %2 = vector.multi_reduction <add>, %1, %cst [1] : vector<64x32xf32> to vector<64xf32>
    %3 = vector.shape_cast %2 : vector<64xf32> to vector<64x1xf32>
    %cst_2 = arith.constant 3.200000e+01 : f32
    %4 = vector.broadcast %cst_2 : f32 to vector<64x1xf32>
    %5 = arith.divf %3, %4 : vector<64x1xf32>
    %6 = vector.broadcast %5 : vector<64x1xf32> to vector<64x32xf32>
    %7 = arith.subf %1, %6 : vector<64x32xf32>
    %8 = arith.mulf %7, %7 : vector<64x32xf32>
    %cst_3 = arith.constant dense<0.000000e+00> : vector<64xf32>
    %9 = vector.multi_reduction <add>, %8, %cst_3 [1] : vector<64x32xf32> to vector<64xf32>
    %10 = vector.shape_cast %9 : vector<64xf32> to vector<64x1xf32>
    %cst_4 = arith.constant 3.200000e+01 : f32
    %11 = vector.broadcast %cst_4 : f32 to vector<64x1xf32>
    %12 = arith.divf %10, %11 : vector<64x1xf32>
    %13 = vector.broadcast %5 : vector<64x1xf32> to vector<64x32xf32>
    %14 = arith.subf %1, %13 : vector<64x32xf32>
    %cst_5 = arith.constant 9.99999974E-6 : f32
    %15 = vector.broadcast %cst_5 : f32 to vector<64x1xf32>
    %16 = arith.addf %12, %15 : vector<64x1xf32>
    %17 = math.rsqrt %16 : vector<64x1xf32>
    %18 = vector.broadcast %17 : vector<64x1xf32> to vector<64x32xf32>
    %19 = arith.mulf %14, %18 : vector<64x32xf32>
    %c0_6 = arith.constant 0 : index
    %c0_7 = arith.constant 0 : index
    %20 = vector.load %arg3[%c0_6, %c0_7] : memref<1x32xf32, #tpu.memory_space<vmem>>, vector<1x32xf32>
    %21 = vector.shape_cast %20 : vector<1x32xf32> to vector<32xf32>
    %22 = vector.shape_cast %21 : vector<32xf32> to vector<1x32xf32>
    %23 = vector.broadcast %22 : vector<1x32xf32> to vector<64x32xf32>
    %24 = arith.mulf %19, %23 : vector<64x32xf32>
    %c0_8 = arith.constant 0 : index
    %c0_9 = arith.constant 0 : index
    %25 = vector.load %arg4[%c0_8, %c0_9] : memref<1x32xf32, #tpu.memory_space<vmem>>, vector<1x32xf32>
    %26 = vector.shape_cast %25 : vector<1x32xf32> to vector<32xf32>
    %27 = vector.shape_cast %26 : vector<32xf32> to vector<1x32xf32>
    %28 = vector.broadcast %27 : vector<1x32xf32> to vector<64x32xf32>
    %29 = arith.addf %24, %28 : vector<64x32xf32>
    %c0_10 = arith.constant 0 : index
    %c0_11 = arith.constant 0 : index
    %30 = vector.load %arg5[%c0_10, %c0_11] : memref<32x96xf32, #tpu.memory_space<vmem>>, vector<32x96xf32>
    %cst_12 = arith.constant dense<0.000000e+00> : vector<64x96xf32>
    %31 = tpu.matmul %29, %30, %cst_12 {dimension_numbers = #tpu.dot_dimension_numbers<[1], [0], [0], [1], [0, 0, 1, 1], [], []>} : vector<64x32xf32>, vector<32x96xf32>, vector<64x96xf32> -> vector<64x96xf32>
    %c0_13 = arith.constant 0 : index
    %c0_14 = arith.constant 0 : index
    %32 = vector.load %arg6[%c0_13, %c0_14] : memref<1x96xf32, #tpu.memory_space<vmem>>, vector<1x96xf32>
    %33 = vector.shape_cast %32 : vector<1x96xf32> to vector<96xf32>
    %34 = vector.shape_cast %33 : vector<96xf32> to vector<1x96xf32>
    %35 = vector.broadcast %34 : vector<1x96xf32> to vector<64x96xf32>
    %36 = arith.addf %31, %35 : vector<64x96xf32>
    %37 = vector.shape_cast %36 : vector<64x96xf32> to vector<4x16x96xf32>
    %c0_15 = arith.constant 0 : index
    %c0_16 = arith.constant 0 : index
    %38 = vector.load %arg7[%c0_15, %c0_16] : memref<32x32xf32, #tpu.memory_space<vmem>>, vector<32x32xf32>
    %cst_17 = arith.constant 0.000000e+00 : f32
    %39 = vector.broadcast %cst_17 : f32 to vector<64x32xf32>
    %40 = vector.extract_strided_slice %37 {offsets = [0, 0, 0], sizes = [4, 16, 8], strides = [1, 1, 1]} : vector<4x16x96xf32> to vector<4x16x8xf32>
    %cst_18 = arith.constant 0.353553385 : f32
    %41 = vector.broadcast %cst_18 : f32 to vector<4x16x8xf32>
    %42 = arith.mulf %40, %41 : vector<4x16x8xf32>
    %43 = vector.extract_strided_slice %37 {offsets = [0, 0, 32], sizes = [4, 16, 8], strides = [1, 1, 1]} : vector<4x16x96xf32> to vector<4x16x8xf32>
    %44 = vector.extract_strided_slice %37 {offsets = [0, 0, 64], sizes = [4, 16, 8], strides = [1, 1, 1]} : vector<4x16x96xf32> to vector<4x16x8xf32>
    "tpu.trace_start"() <{level = 10 : i32, message = "wnd,wmd->wnm"}> : () -> ()
    %cst_19 = arith.constant dense<0.000000e+00> : vector<4x16x16xf32>
    %45 = tpu.matmul %42, %43, %cst_19 {dimension_numbers = #tpu.dot_dimension_numbers<[2], [2], [1], [1], [0, 0, 0, 1, 1, 1], [0], [0]>} : vector<4x16x8xf32>, vector<4x16x8xf32>, vector<4x16x16xf32> -> vector<4x16x16xf32>
    "tpu.trace_stop"() : () -> ()
    %c0_20 = arith.constant 0 : index
    %c0_21 = arith.constant 0 : index
    %c0_22 = arith.constant 0 : index
    %c0_23 = arith.constant 0 : index
    %46 = vector.load %arg2[%c0_20, %c0_21, %c0_22, %c0_23] : memref<4x4x16x16xf32, #tpu.memory_space<vmem>>, vector<1x4x16x16xf32>
    %47 = vector.shape_cast %46 : vector<1x4x16x16xf32> to vector<4x16x16xf32>
    %48 = arith.addf %45, %47 : vector<4x16x16xf32>
    %cst_24 = arith.constant dense<0xFF800000> : vector<4x16xf32>
    %49 = vector.multi_reduction <maximumf>, %48, %cst_24 [2] : vector<4x16x16xf32> to vector<4x16xf32>
    %50 = vector.shape_cast %49 : vector<4x16xf32> to vector<4x16x1xf32>
    %51 = vector.broadcast %50 : vector<4x16x1xf32> to vector<4x16x16xf32>
    %52 = arith.subf %48, %51 : vector<4x16x16xf32>
    %53 = math.exp %52 : vector<4x16x16xf32>
    %cst_25 = arith.constant dense<0.000000e+00> : vector<4x16xf32>
    %54 = vector.multi_reduction <add>, %53, %cst_25 [2] : vector<4x16x16xf32> to vector<4x16xf32>
    %55 = vector.shape_cast %54 : vector<4x16xf32> to vector<4x16x1xf32>
    %56 = tpu.reciprocal %55 {approx = true} : vector<4x16x1xf32> -> vector<4x16x1xf32>
    %57 = vector.broadcast %56 : vector<4x16x1xf32> to vector<4x16x16xf32>
    %58 = arith.mulf %53, %57 : vector<4x16x16xf32>
    "tpu.trace_start"() <{level = 10 : i32, message = "wnm,wmd->wnd"}> : () -> ()
    %cst_26 = arith.constant dense<0.000000e+00> : vector<4x16x8xf32>
    %59 = tpu.matmul %58, %44, %cst_26 {dimension_numbers = #tpu.dot_dimension_numbers<[2], [1], [1], [2], [0, 0, 0, 1, 1, 2], [0], [0]>} : vector<4x16x16xf32>, vector<4x16x8xf32>, vector<4x16x8xf32> -> vector<4x16x8xf32>
    "tpu.trace_stop"() : () -> ()
    %60 = vector.shape_cast %59 : vector<4x16x8xf32> to vector<64x8xf32>
    %61 = vector.extract_strided_slice %38 {offsets = [0, 0], sizes = [8, 32], strides = [1, 1]} : vector<32x32xf32> to vector<8x32xf32>
    %cst_27 = arith.constant dense<0.000000e+00> : vector<64x32xf32>
    %62 = tpu.matmul %60, %61, %cst_27 {dimension_numbers = #tpu.dot_dimension_numbers<[1], [0], [0], [1], [0, 0, 1, 1], [], []>} : vector<64x8xf32>, vector<8x32xf32>, vector<64x32xf32> -> vector<64x32xf32>
    %63 = arith.addf %39, %62 : vector<64x32xf32>
    %64 = vector.extract_strided_slice %37 {offsets = [0, 0, 8], sizes = [4, 16, 8], strides = [1, 1, 1]} : vector<4x16x96xf32> to vector<4x16x8xf32>
    %cst_28 = arith.constant 0.353553385 : f32
    %65 = vector.broadcast %cst_28 : f32 to vector<4x16x8xf32>
    %66 = arith.mulf %64, %65 : vector<4x16x8xf32>
    %67 = vector.extract_strided_slice %37 {offsets = [0, 0, 40], sizes = [4, 16, 8], strides = [1, 1, 1]} : vector<4x16x96xf32> to vector<4x16x8xf32>
    %68 = vector.extract_strided_slice %37 {offsets = [0, 0, 72], sizes = [4, 16, 8], strides = [1, 1, 1]} : vector<4x16x96xf32> to vector<4x16x8xf32>
    "tpu.trace_start"() <{level = 10 : i32, message = "wnd,wmd->wnm"}> : () -> ()
    %cst_29 = arith.constant dense<0.000000e+00> : vector<4x16x16xf32>
    %69 = tpu.matmul %66, %67, %cst_29 {dimension_numbers = #tpu.dot_dimension_numbers<[2], [2], [1], [1], [0, 0, 0, 1, 1, 1], [0], [0]>} : vector<4x16x8xf32>, vector<4x16x8xf32>, vector<4x16x16xf32> -> vector<4x16x16xf32>
    "tpu.trace_stop"() : () -> ()
    %c1 = arith.constant 1 : index
    %c0_30 = arith.constant 0 : index
    %c0_31 = arith.constant 0 : index
    %c0_32 = arith.constant 0 : index
    %70 = vector.load %arg2[%c1, %c0_30, %c0_31, %c0_32] : memref<4x4x16x16xf32, #tpu.memory_space<vmem>>, vector<1x4x16x16xf32>
    %71 = vector.shape_cast %70 : vector<1x4x16x16xf32> to vector<4x16x16xf32>
    %72 = arith.addf %69, %71 : vector<4x16x16xf32>
    %cst_33 = arith.constant dense<0xFF800000> : vector<4x16xf32>
    %73 = vector.multi_reduction <maximumf>, %72, %cst_33 [2] : vector<4x16x16xf32> to vector<4x16xf32>
    %74 = vector.shape_cast %73 : vector<4x16xf32> to vector<4x16x1xf32>
    %75 = vector.broadcast %74 : vector<4x16x1xf32> to vector<4x16x16xf32>
    %76 = arith.subf %72, %75 : vector<4x16x16xf32>
    %77 = math.exp %76 : vector<4x16x16xf32>
    %cst_34 = arith.constant dense<0.000000e+00> : vector<4x16xf32>
    %78 = vector.multi_reduction <add>, %77, %cst_34 [2] : vector<4x16x16xf32> to vector<4x16xf32>
    %79 = vector.shape_cast %78 : vector<4x16xf32> to vector<4x16x1xf32>
    %80 = tpu.reciprocal %79 {approx = true} : vector<4x16x1xf32> -> vector<4x16x1xf32>
    %81 = vector.broadcast %80 : vector<4x16x1xf32> to vector<4x16x16xf32>
    %82 = arith.mulf %77, %81 : vector<4x16x16xf32>
    "tpu.trace_start"() <{level = 10 : i32, message = "wnm,wmd->wnd"}> : () -> ()
    %cst_35 = arith.constant dense<0.000000e+00> : vector<4x16x8xf32>
    %83 = tpu.matmul %82, %68, %cst_35 {dimension_numbers = #tpu.dot_dimension_numbers<[2], [1], [1], [2], [0, 0, 0, 1, 1, 2], [0], [0]>} : vector<4x16x16xf32>, vector<4x16x8xf32>, vector<4x16x8xf32> -> vector<4x16x8xf32>
    "tpu.trace_stop"() : () -> ()
    %84 = vector.shape_cast %83 : vector<4x16x8xf32> to vector<64x8xf32>
    %85 = vector.extract_strided_slice %38 {offsets = [8, 0], sizes = [8, 32], strides = [1, 1]} : vector<32x32xf32> to vector<8x32xf32>
    %cst_36 = arith.constant dense<0.000000e+00> : vector<64x32xf32>
    %86 = tpu.matmul %84, %85, %cst_36 {dimension_numbers = #tpu.dot_dimension_numbers<[1], [0], [0], [1], [0, 0, 1, 1], [], []>} : vector<64x8xf32>, vector<8x32xf32>, vector<64x32xf32> -> vector<64x32xf32>
    %87 = arith.addf %63, %86 : vector<64x32xf32>
    %88 = vector.extract_strided_slice %37 {offsets = [0, 0, 16], sizes = [4, 16, 8], strides = [1, 1, 1]} : vector<4x16x96xf32> to vector<4x16x8xf32>
    %cst_37 = arith.constant 0.353553385 : f32
    %89 = vector.broadcast %cst_37 : f32 to vector<4x16x8xf32>
    %90 = arith.mulf %88, %89 : vector<4x16x8xf32>
    %91 = vector.extract_strided_slice %37 {offsets = [0, 0, 48], sizes = [4, 16, 8], strides = [1, 1, 1]} : vector<4x16x96xf32> to vector<4x16x8xf32>
    %92 = vector.extract_strided_slice %37 {offsets = [0, 0, 80], sizes = [4, 16, 8], strides = [1, 1, 1]} : vector<4x16x96xf32> to vector<4x16x8xf32>
    "tpu.trace_start"() <{level = 10 : i32, message = "wnd,wmd->wnm"}> : () -> ()
    %cst_38 = arith.constant dense<0.000000e+00> : vector<4x16x16xf32>
    %93 = tpu.matmul %90, %91, %cst_38 {dimension_numbers = #tpu.dot_dimension_numbers<[2], [2], [1], [1], [0, 0, 0, 1, 1, 1], [0], [0]>} : vector<4x16x8xf32>, vector<4x16x8xf32>, vector<4x16x16xf32> -> vector<4x16x16xf32>
    "tpu.trace_stop"() : () -> ()
    %c2 = arith.constant 2 : index
    %c0_39 = arith.constant 0 : index
    %c0_40 = arith.constant 0 : index
    %c0_41 = arith.constant 0 : index
    %94 = vector.load %arg2[%c2, %c0_39, %c0_40, %c0_41] : memref<4x4x16x16xf32, #tpu.memory_space<vmem>>, vector<1x4x16x16xf32>
    %95 = vector.shape_cast %94 : vector<1x4x16x16xf32> to vector<4x16x16xf32>
    %96 = arith.addf %93, %95 : vector<4x16x16xf32>
    %cst_42 = arith.constant dense<0xFF800000> : vector<4x16xf32>
    %97 = vector.multi_reduction <maximumf>, %96, %cst_42 [2] : vector<4x16x16xf32> to vector<4x16xf32>
    %98 = vector.shape_cast %97 : vector<4x16xf32> to vector<4x16x1xf32>
    %99 = vector.broadcast %98 : vector<4x16x1xf32> to vector<4x16x16xf32>
    %100 = arith.subf %96, %99 : vector<4x16x16xf32>
    %101 = math.exp %100 : vector<4x16x16xf32>
    %cst_43 = arith.constant dense<0.000000e+00> : vector<4x16xf32>
    %102 = vector.multi_reduction <add>, %101, %cst_43 [2] : vector<4x16x16xf32> to vector<4x16xf32>
    %103 = vector.shape_cast %102 : vector<4x16xf32> to vector<4x16x1xf32>
    %104 = tpu.reciprocal %103 {approx = true} : vector<4x16x1xf32> -> vector<4x16x1xf32>
    %105 = vector.broadcast %104 : vector<4x16x1xf32> to vector<4x16x16xf32>
    %106 = arith.mulf %101, %105 : vector<4x16x16xf32>
    "tpu.trace_start"() <{level = 10 : i32, message = "wnm,wmd->wnd"}> : () -> ()
    %cst_44 = arith.constant dense<0.000000e+00> : vector<4x16x8xf32>
    %107 = tpu.matmul %106, %92, %cst_44 {dimension_numbers = #tpu.dot_dimension_numbers<[2], [1], [1], [2], [0, 0, 0, 1, 1, 2], [0], [0]>} : vector<4x16x16xf32>, vector<4x16x8xf32>, vector<4x16x8xf32> -> vector<4x16x8xf32>
    "tpu.trace_stop"() : () -> ()
    %108 = vector.shape_cast %107 : vector<4x16x8xf32> to vector<64x8xf32>
    %109 = vector.extract_strided_slice %38 {offsets = [16, 0], sizes = [8, 32], strides = [1, 1]} : vector<32x32xf32> to vector<8x32xf32>
    %cst_45 = arith.constant dense<0.000000e+00> : vector<64x32xf32>
    %110 = tpu.matmul %108, %109, %cst_45 {dimension_numbers = #tpu.dot_dimension_numbers<[1], [0], [0], [1], [0, 0, 1, 1], [], []>} : vector<64x8xf32>, vector<8x32xf32>, vector<64x32xf32> -> vector<64x32xf32>
    %111 = arith.addf %87, %110 : vector<64x32xf32>
    %112 = vector.extract_strided_slice %37 {offsets = [0, 0, 24], sizes = [4, 16, 8], strides = [1, 1, 1]} : vector<4x16x96xf32> to vector<4x16x8xf32>
    %cst_46 = arith.constant 0.353553385 : f32
    %113 = vector.broadcast %cst_46 : f32 to vector<4x16x8xf32>
    %114 = arith.mulf %112, %113 : vector<4x16x8xf32>
    %115 = vector.extract_strided_slice %37 {offsets = [0, 0, 56], sizes = [4, 16, 8], strides = [1, 1, 1]} : vector<4x16x96xf32> to vector<4x16x8xf32>
    %116 = vector.extract_strided_slice %37 {offsets = [0, 0, 88], sizes = [4, 16, 8], strides = [1, 1, 1]} : vector<4x16x96xf32> to vector<4x16x8xf32>
    "tpu.trace_start"() <{level = 10 : i32, message = "wnd,wmd->wnm"}> : () -> ()
    %cst_47 = arith.constant dense<0.000000e+00> : vector<4x16x16xf32>
    %117 = tpu.matmul %114, %115, %cst_47 {dimension_numbers = #tpu.dot_dimension_numbers<[2], [2], [1], [1], [0, 0, 0, 1, 1, 1], [0], [0]>} : vector<4x16x8xf32>, vector<4x16x8xf32>, vector<4x16x16xf32> -> vector<4x16x16xf32>
    "tpu.trace_stop"() : () -> ()
    %c3 = arith.constant 3 : index
    %c0_48 = arith.constant 0 : index
    %c0_49 = arith.constant 0 : index
    %c0_50 = arith.constant 0 : index
    %118 = vector.load %arg2[%c3, %c0_48, %c0_49, %c0_50] : memref<4x4x16x16xf32, #tpu.memory_space<vmem>>, vector<1x4x16x16xf32>
    %119 = vector.shape_cast %118 : vector<1x4x16x16xf32> to vector<4x16x16xf32>
    %120 = arith.addf %117, %119 : vector<4x16x16xf32>
    %cst_51 = arith.constant dense<0xFF800000> : vector<4x16xf32>
    %121 = vector.multi_reduction <maximumf>, %120, %cst_51 [2] : vector<4x16x16xf32> to vector<4x16xf32>
    %122 = vector.shape_cast %121 : vector<4x16xf32> to vector<4x16x1xf32>
    %123 = vector.broadcast %122 : vector<4x16x1xf32> to vector<4x16x16xf32>
    %124 = arith.subf %120, %123 : vector<4x16x16xf32>
    %125 = math.exp %124 : vector<4x16x16xf32>
    %cst_52 = arith.constant dense<0.000000e+00> : vector<4x16xf32>
    %126 = vector.multi_reduction <add>, %125, %cst_52 [2] : vector<4x16x16xf32> to vector<4x16xf32>
    %127 = vector.shape_cast %126 : vector<4x16xf32> to vector<4x16x1xf32>
    %128 = tpu.reciprocal %127 {approx = true} : vector<4x16x1xf32> -> vector<4x16x1xf32>
    %129 = vector.broadcast %128 : vector<4x16x1xf32> to vector<4x16x16xf32>
    %130 = arith.mulf %125, %129 : vector<4x16x16xf32>
    "tpu.trace_start"() <{level = 10 : i32, message = "wnm,wmd->wnd"}> : () -> ()
    %cst_53 = arith.constant dense<0.000000e+00> : vector<4x16x8xf32>
    %131 = tpu.matmul %130, %116, %cst_53 {dimension_numbers = #tpu.dot_dimension_numbers<[2], [1], [1], [2], [0, 0, 0, 1, 1, 2], [0], [0]>} : vector<4x16x16xf32>, vector<4x16x8xf32>, vector<4x16x8xf32> -> vector<4x16x8xf32>
    "tpu.trace_stop"() : () -> ()
    %132 = vector.shape_cast %131 : vector<4x16x8xf32> to vector<64x8xf32>
    %133 = vector.extract_strided_slice %38 {offsets = [24, 0], sizes = [8, 32], strides = [1, 1]} : vector<32x32xf32> to vector<8x32xf32>
    %cst_54 = arith.constant dense<0.000000e+00> : vector<64x32xf32>
    %134 = tpu.matmul %132, %133, %cst_54 {dimension_numbers = #tpu.dot_dimension_numbers<[1], [0], [0], [1], [0, 0, 1, 1], [], []>} : vector<64x8xf32>, vector<8x32xf32>, vector<64x32xf32> -> vector<64x32xf32>
    %135 = arith.addf %111, %134 : vector<64x32xf32>
    %136 = arith.addf %1, %135 : vector<64x32xf32>
    %c0_55 = arith.constant 0 : index
    %c0_56 = arith.constant 0 : index
    %137 = vector.load %arg8[%c0_55, %c0_56] : memref<1x32xf32, #tpu.memory_space<vmem>>, vector<1x32xf32>
    %138 = vector.shape_cast %137 : vector<1x32xf32> to vector<32xf32>
    %139 = vector.shape_cast %138 : vector<32xf32> to vector<1x32xf32>
    %140 = vector.broadcast %139 : vector<1x32xf32> to vector<64x32xf32>
    %141 = arith.addf %136, %140 : vector<64x32xf32>
    %cst_57 = arith.constant dense<0.000000e+00> : vector<64xf32>
    %142 = vector.multi_reduction <add>, %141, %cst_57 [1] : vector<64x32xf32> to vector<64xf32>
    %143 = vector.shape_cast %142 : vector<64xf32> to vector<64x1xf32>
    %cst_58 = arith.constant 3.200000e+01 : f32
    %144 = vector.broadcast %cst_58 : f32 to vector<64x1xf32>
    %145 = arith.divf %143, %144 : vector<64x1xf32>
    %146 = vector.broadcast %145 : vector<64x1xf32> to vector<64x32xf32>
    %147 = arith.subf %141, %146 : vector<64x32xf32>
    %148 = arith.mulf %147, %147 : vector<64x32xf32>
    %cst_59 = arith.constant dense<0.000000e+00> : vector<64xf32>
    %149 = vector.multi_reduction <add>, %148, %cst_59 [1] : vector<64x32xf32> to vector<64xf32>
    %150 = vector.shape_cast %149 : vector<64xf32> to vector<64x1xf32>
    %cst_60 = arith.constant 3.200000e+01 : f32
    %151 = vector.broadcast %cst_60 : f32 to vector<64x1xf32>
    %152 = arith.divf %150, %151 : vector<64x1xf32>
    %153 = vector.broadcast %145 : vector<64x1xf32> to vector<64x32xf32>
    %154 = arith.subf %141, %153 : vector<64x32xf32>
    %cst_61 = arith.constant 9.99999974E-6 : f32
    %155 = vector.broadcast %cst_61 : f32 to vector<64x1xf32>
    %156 = arith.addf %152, %155 : vector<64x1xf32>
    %157 = math.rsqrt %156 : vector<64x1xf32>
    %158 = vector.broadcast %157 : vector<64x1xf32> to vector<64x32xf32>
    %159 = arith.mulf %154, %158 : vector<64x32xf32>
    %c0_62 = arith.constant 0 : index
    %c0_63 = arith.constant 0 : index
    %160 = vector.load %arg9[%c0_62, %c0_63] : memref<1x32xf32, #tpu.memory_space<vmem>>, vector<1x32xf32>
    %161 = vector.shape_cast %160 : vector<1x32xf32> to vector<32xf32>
    %162 = vector.shape_cast %161 : vector<32xf32> to vector<1x32xf32>
    %163 = vector.broadcast %162 : vector<1x32xf32> to vector<64x32xf32>
    %164 = arith.mulf %159, %163 : vector<64x32xf32>
    %c0_64 = arith.constant 0 : index
    %c0_65 = arith.constant 0 : index
    %165 = vector.load %arg10[%c0_64, %c0_65] : memref<1x32xf32, #tpu.memory_space<vmem>>, vector<1x32xf32>
    %166 = vector.shape_cast %165 : vector<1x32xf32> to vector<32xf32>
    %167 = vector.shape_cast %166 : vector<32xf32> to vector<1x32xf32>
    %168 = vector.broadcast %167 : vector<1x32xf32> to vector<64x32xf32>
    %169 = arith.addf %164, %168 : vector<64x32xf32>
    %c0_66 = arith.constant 0 : index
    %c0_67 = arith.constant 0 : index
    %170 = vector.load %arg11[%c0_66, %c0_67] : memref<32x128xf32, #tpu.memory_space<vmem>>, vector<32x128xf32>
    %cst_68 = arith.constant dense<0.000000e+00> : vector<64x128xf32>
    %171 = tpu.matmul %169, %170, %cst_68 {dimension_numbers = #tpu.dot_dimension_numbers<[1], [0], [0], [1], [0, 0, 1, 1], [], []>} : vector<64x32xf32>, vector<32x128xf32>, vector<64x128xf32> -> vector<64x128xf32>
    %c0_69 = arith.constant 0 : index
    %c0_70 = arith.constant 0 : index
    %172 = vector.load %arg12[%c0_69, %c0_70] : memref<1x128xf32, #tpu.memory_space<vmem>>, vector<1x128xf32>
    %173 = vector.shape_cast %172 : vector<1x128xf32> to vector<128xf32>
    %174 = vector.shape_cast %173 : vector<128xf32> to vector<1x128xf32>
    %175 = vector.broadcast %174 : vector<1x128xf32> to vector<64x128xf32>
    %176 = arith.addf %171, %175 : vector<64x128xf32>
    %cst_71 = arith.constant 5.000000e-01 : f32
    %177 = vector.broadcast %cst_71 : f32 to vector<64x128xf32>
    %178 = arith.mulf %177, %176 : vector<64x128xf32>
    %cst_72 = arith.constant 0.707106769 : f32
    %179 = vector.broadcast %cst_72 : f32 to vector<64x128xf32>
    %180 = arith.mulf %176, %179 : vector<64x128xf32>
    %181 = math.erf %180 : vector<64x128xf32>
    %cst_73 = arith.constant 1.000000e+00 : f32
    %182 = vector.broadcast %cst_73 : f32 to vector<64x128xf32>
    %183 = arith.addf %182, %181 : vector<64x128xf32>
    %184 = arith.mulf %178, %183 : vector<64x128xf32>
    %c0_74 = arith.constant 0 : index
    %c0_75 = arith.constant 0 : index
    %185 = vector.load %arg13[%c0_74, %c0_75] : memref<128x32xf32, #tpu.memory_space<vmem>>, vector<128x32xf32>
    %cst_76 = arith.constant dense<0.000000e+00> : vector<64x32xf32>
    %186 = tpu.matmul %184, %185, %cst_76 {dimension_numbers = #tpu.dot_dimension_numbers<[1], [0], [0], [1], [0, 0, 1, 1], [], []>} : vector<64x128xf32>, vector<128x32xf32>, vector<64x32xf32> -> vector<64x32xf32>
    %c0_77 = arith.constant 0 : index
    %c0_78 = arith.constant 0 : index
    %187 = vector.load %arg14[%c0_77, %c0_78] : memref<1x32xf32, #tpu.memory_space<vmem>>, vector<1x32xf32>
    %188 = vector.shape_cast %187 : vector<1x32xf32> to vector<32xf32>
    %189 = vector.shape_cast %188 : vector<32xf32> to vector<1x32xf32>
    %190 = vector.broadcast %189 : vector<1x32xf32> to vector<64x32xf32>
    %191 = arith.addf %186, %190 : vector<64x32xf32>
    %192 = arith.addf %141, %191 : vector<64x32xf32>
    %c0_79 = arith.constant 0 : index
    %c0_80 = arith.constant 0 : index
    %c0_81 = arith.constant 0 : index
    %193 = vector.load %arg15[%c0_79, %c0_80, %c0_81] : memref<1x64x32xf32, #tpu.memory_space<vmem>>, vector<1x64x32xf32>
    %194 = vector.shape_cast %193 : vector<1x64x32xf32> to vector<64x32xf32>
    %195 = vector.shape_cast %192 : vector<64x32xf32> to vector<1x64x32xf32>
    tpu.vector_store %arg15[%c0_79, %c0_80, %c0_81], %195 {strides = array<i32>} : memref<1x64x32xf32, #tpu.memory_space<vmem>>, vector<1x64x32xf32>,
    return
  }
  func.func @transform_0(%arg0: i32) -> (i32, i32, i32) {
    %c0_i32 = arith.constant 0 : i32
    %c0_i32_0 = arith.constant 0 : i32
    %c0_i32_1 = arith.constant 0 : i32
    return %arg0, %c0_i32, %c0_i32_0 : i32, i32, i32
  }
  func.func @transform_1(%arg0: i32) -> (i32, i32, i32, i32) {
    %c0_i32 = arith.constant 0 : i32
    %c0_i32_0 = arith.constant 0 : i32
    %c0_i32_1 = arith.constant 0 : i32
    %c0_i32_2 = arith.constant 0 : i32
    %c0_i32_3 = arith.constant 0 : i32
    return %c0_i32, %c0_i32_0, %c0_i32_1, %c0_i32_2 : i32, i32, i32, i32
  }
  func.func @transform_2(%arg0: i32) -> (i32, i32) {
    %c0_i32 = arith.constant 0 : i32
    %c0_i32_0 = arith.constant 0 : i32
    %c0_i32_1 = arith.constant 0 : i32
    return %c0_i32, %c0_i32_0 : i32, i32
  }
  func.func @transform_3(%arg0: i32) -> (i32, i32) {
    %c0_i32 = arith.constant 0 : i32
    %c0_i32_0 = arith.constant 0 : i32
    %c0_i32_1 = arith.constant 0 : i32
    return %c0_i32, %c0_i32_0 : i32, i32
  }
  func.func @transform_4(%arg0: i32) -> (i32, i32) {
    %c0_i32 = arith.constant 0 : i32
    %c0_i32_0 = arith.constant 0 : i32
    %c0_i32_1 = arith.constant 0 : i32
    return %c0_i32, %c0_i32_0 : i32, i32
  }
  func.func @transform_5(%arg0: i32) -> (i32, i32) {
    %c0_i32 = arith.constant 0 : i32
    %c0_i32_0 = arith.constant 0 : i32
    %c0_i32_1 = arith.constant 0 : i32
    return %c0_i32, %c0_i32_0 : i32, i32
  }
  func.func @transform_6(%arg0: i32) -> (i32, i32) {
    %c0_i32 = arith.constant 0 : i32
    %c0_i32_0 = arith.constant 0 : i32
    %c0_i32_1 = arith.constant 0 : i32
    return %c0_i32, %c0_i32_0 : i32, i32
  }
  func.func @transform_7(%arg0: i32) -> (i32, i32) {
    %c0_i32 = arith.constant 0 : i32
    %c0_i32_0 = arith.constant 0 : i32
    %c0_i32_1 = arith.constant 0 : i32
    return %c0_i32, %c0_i32_0 : i32, i32
  }
  func.func @transform_8(%arg0: i32) -> (i32, i32) {
    %c0_i32 = arith.constant 0 : i32
    %c0_i32_0 = arith.constant 0 : i32
    %c0_i32_1 = arith.constant 0 : i32
    return %c0_i32, %c0_i32_0 : i32, i32
  }
  func.func @transform_9(%arg0: i32) -> (i32, i32) {
    %c0_i32 = arith.constant 0 : i32
    %c0_i32_0 = arith.constant 0 : i32
    %c0_i32_1 = arith.constant 0 : i32
    return %c0_i32, %c0_i32_0 : i32, i32
  }
  func.func @transform_10(%arg0: i32) -> (i32, i32) {
    %c0_i32 = arith.constant 0 : i32
    %c0_i32_0 = arith.constant 0 : i32
    %c0_i32_1 = arith.constant 0 : i32
    return %c0_i32, %c0_i32_0 : i32, i32
  }
  func.func @transform_11(%arg0: i32) -> (i32, i32) {
    %c0_i32 = arith.constant 0 : i32
    %c0_i32_0 = arith.constant 0 : i32
    %c0_i32_1 = arith.constant 0 : i32
    return %c0_i32, %c0_i32_0 : i32, i32
  }
  func.func @transform_12(%arg0: i32) -> (i32, i32) {
    %c0_i32 = arith.constant 0 : i32
    %c0_i32_0 = arith.constant 0 : i32
    %c0_i32_1 = arith.constant 0 : i32
    return %c0_i32, %c0_i32_0 : i32, i32
  }
  func.func @transform_13(%arg0: i32) -> (i32, i32) {
    %c0_i32 = arith.constant 0 : i32
    %c0_i32_0 = arith.constant 0 : i32
    %c0_i32_1 = arith.constant 0 : i32
    return %c0_i32, %c0_i32_0 : i32, i32
  }
  func.func @transform_14(%arg0: i32) -> (i32, i32, i32) {
    %c0_i32 = arith.constant 0 : i32
    %c0_i32_0 = arith.constant 0 : i32
    %c0_i32_1 = arith.constant 0 : i32
    return %arg0, %c0_i32, %c0_i32_0 : i32, i32, i32
  }
}

</mosaic_0001>

<bundles_post_ra>
// kernel: layer_fn.2
= control target key start
LH: loop header
LB: loop body
LE: loop exit
PB: predicated region body
PF: predicated region fallthrough
CT: control target
= control target key end

     0   :  { %s6131_s29 = smov 0   ;;  %s7186_s0 = inlined_call_operand.vmem [shape: f32[2,64,32], index: 0, kind: input, shape index: {}]   ;;  %s7187_s1 = inlined_call_operand.vmem [shape: f32[4,4,16,16], index: 1, kind: input, shape index: {}]   ;;  %s7188_s2 = inlined_call_operand.vmem [shape: f32[1,32], index: 2, kind: input, shape index: {}]   ;;  %s7189_s3 = inlined_call_operand.vmem [shape: f32[1,32], index: 3, kind: input, shape index: {}]   ;;  %s7190_s4 = inlined_call_operand.vmem [shape: f32[32,96], index: 4, kind: input, shape index: {}]   ;;  %s7191_s5 = inlined_call_operand.vmem [shape: f32[1,96], index: 5, kind: input, shape index: {}]   ;;  %s7192_s6 = inlined_call_operand.vmem [shape: f32[32,32], index: 6, kind: input, shape index: {}]   ;;  %s7193_s7 = inlined_call_operand.vmem [shape: f32[1,32], index: 7, kind: input, shape index: {}]   ;;  %s7194_s8 = inlined_call_operand.vmem [shape: f32[1,32], index: 8, kind: input, shape index: {}]   ;;  %s7195_s9 = inlined_call_operand.vmem [shape: f32[1,32], index: 9, kind: input, shape index: {}]   ;;  %s7196_s10 = inlined_call_operand.vmem [shape: f32[32,128], index: 10, kind: input, shape index: {}]   ;;  %s7197_s11 = inlined_call_operand.vmem [shape: f32[1,128], index: 11, kind: input, shape index: {}]   ;;  %s7198_s12 = inlined_call_operand.vmem [shape: f32[128,32], index: 12, kind: input, shape index: {}]   ;;  %s7199_s13 = inlined_call_operand.vmem [shape: f32[1,32], index: 13, kind: input, shape index: {}]   ;;  %s7200_s14 = inlined_call_operand.vmem [shape: f32[2,64,32], index: 14, kind: output, shape index: {}]  }
   0x1 LB: > { %s5069_s30 = sadd.s32 4294967295, %s6043_s29   ;;  %p5073_p0 = scmp.ge.s32.totalorder %s6043_s29, 1  ;;  %s6043_s29 = sphi %s6131_s29, %s24_s29  }
   0x2   : > { %p412_p1 = scmp.lt.s32.totalorder %s6043_s29, 3 }
   0x4   : > { %p413_p2 = pnand %p5073_p0, %p412_p1 }
   0x5   : > { %p458_p3 = scmp.lt.s32.totalorder (!%p413_p2), %s5069_s30, 1  ;;  %s6045_s21 = smov (!%p413_p2), 96  }
   0x6   : > { %416 = sbr.rel (%p413_p2) target bundleno = 4373 (0x1115), region = 76  ;;  %s6046_s26 = smov (!%p413_p2), 64  }
   0x7   : > { %s6047_s27 = smov (!%p413_p2), 88   ;;  %s6048_s28 = smov (!%p413_p2), 120  }
   0x8   : > { %s6050_s22 = smov (!%p413_p2), 80   ;;  %s6051_s23 = smov (!%p413_p2), 112  }
   0x9   : > { %s6052_s20 = smov (!%p413_p2), 48   ;;  %s6055_s16 = smov (!%p413_p2), 40  }
   0xb   : > { %s7202_s30 = smov (!%p458_p3, %s5069_s30), 1  ;;  %vm476_vm0 = vcmask 261120   ;;  %v615_v56 = vld [vmem:[%s7190_s4 + $0x18] sm:$0xff]  ;;  %v614_v57 = vld [vmem:[%s7190_s4 + $0x10] sm:$0xff]  ;;  %v613_v58 = vld [vmem:[%s7190_s4 + $0x8] sm:$0xff]  ;;  %vm778_vm1 = vcmask 64512  }
   0xc   : > { %s5256_s15 = sshll.u32 %s7202_s30, 6  ;;  %5470 = vmatprep.subr.mxu0 %v615_v56  ;;  %v612_v59 = vld [vmem:[%s7190_s4] sm:$0xff]  ;;  %vm1137_vm2 = vcmask 130048  }
   0xd   : > { %s6147_s18 = scalar_lea.vmem %s7186_s0, %s5256_s15  ;;  %5471 = vmatpush3.msra.mxu0 %v615_v56 }
   0xe   : > { %v468_v0 = vld [vmem:[%s6147_s18] sm:$0xff]  ;;  %v470_v1 = vld [vmem:[%s6147_s18 + $0x10] sm:$0xff]  ;;  %v469_v2 = vld [vmem:[%s6147_s18 + $0x8] sm:$0xff]  ;;  %5472 = vmatprep.subr.mxu0 %v614_v57 }
   0xf   : > { %v477_v3 = vsel %vm476_vm0, %v468_v0, 0.0  ;;  %v483_v4 = vsel %vm476_vm0, %v470_v1, 0.0  ;;  %v471_v5 = vld [vmem:[%s6147_s18 + $0x18] sm:$0xff]  ;;  %v480_v6 = vsel %vm476_vm0, %v469_v2, 0.0  ;;  %v472_v8 = vld [vmem:[%s6147_s18 + $0x20] sm:$0xff]  ;;  %v473_v9 = vld [vmem:[%s6147_s18 + $0x28] sm:$0xff]  ;;  %5473 = vmatpush3.msra.mxu0 %v614_v57 }
  0x10   : > { %478 = vadd.xlane.f32.xlu0 %v477_v3  ;;  %484 = vadd.xlane.f32.xlu1 %v483_v4  ;;  %v486_v7 = vsel %vm476_vm0, %v471_v5, 0.0  ;;  %v489_v10 = vsel %vm476_vm0, %v472_v8, 0.0  ;;  %v492_v11 = vsel %vm476_vm0, %v473_v9, 0.0  ;;  %v474_v12 = vld [vmem:[%s6147_s18 + $0x30] sm:$0xff]  ;;  %v475_v13 = vld [vmem:[%s6147_s18 + $0x38] sm:$0xff] }
  0x11   : > { %v495_v14 = vsel %vm476_vm0, %v474_v12, 0.0  ;;  %v498_v15 = vsel %vm476_vm0, %v475_v13, 0.0  ;;  %5474 = vmatprep.subr.mxu0 %v613_v58 }
  0x12   : > { %5475 = vmatpush3.msra.mxu0 %v613_v58 }
  0x13   : > { %5476 = vmatprep.subr.mxu0 %v612_v59 }
  0x14   : > { %481 = vadd.xlane.f32.xlu0 %v480_v6  ;;  %487 = vadd.xlane.f32.xlu1 %v486_v7 }
  0x15   : > { %5477 = vmatpush3.msra.mxu0 %v612_v59 }
  0x18   : > { %490 = vadd.xlane.f32.xlu0 %v489_v10  ;;  %493 = vadd.xlane.f32.xlu1 %v492_v11 }
  0x1c   : > { %496 = vadd.xlane.f32.xlu0 %v495_v14  ;;  %499 = vadd.xlane.f32.xlu1 %v498_v15 }
  0x99   : > { %v479_v16 = vpop.xlane.xlu0 %478  ;;  %v485_v17 = vpop.xlane.xlu1 %484 }
  0x9a   : > { %v502_v18 = vmul.f32 0.03125, %v479_v16  ;;  %v504_v19 = vmul.f32 0.03125, %v485_v17 }
  0x9c   : > { %v6165_v20 = vsub.f32 %v468_v0, %v502_v18  ;;  %v6167_v21 = vsub.f32 %v470_v1, %v504_v19 }
  0x9d   : > { %v482_v22 = vpop.xlane.xlu0 %481  ;;  %v488_v23 = vpop.xlane.xlu1 %487 }
  0x9e   : > { %v503_v24 = vmul.f32 0.03125, %v482_v22  ;;  %v505_v25 = vmul.f32 0.03125, %v488_v23  ;;  %v518_v26 = vmul.f32 %v6165_v20, %v6165_v20  ;;  %v520_v27 = vmul.f32 %v6167_v21, %v6167_v21  ;;  %v5078_v22 = vld [vmem:[%s7188_s2] ss:$0 sm:$0xff] }
  0xa0   : > { %v6173_v28 = vsub.f32 %v469_v2, %v503_v24  ;;  %v6175_v29 = vsub.f32 %v471_v5, %v505_v25  ;;  %v526_v30 = vsel %vm476_vm0, %v518_v26, 0.0  ;;  %v532_v33 = vsel %vm476_vm0, %v520_v27, 0.0  ;;  %v5079_v25 = vld [vmem:[%s7189_s3] ss:$0 sm:$0xff] }
  0xa1   : > { %527 = vadd.xlane.f32.xlu0 %v526_v30  ;;  %v491_v31 = vpop.xlane.xlu0 %490  ;;  %v494_v32 = vpop.xlane.xlu1 %493 }
  0xa2   : > { %v506_v34 = vmul.f32 0.03125, %v491_v31  ;;  %v507_v35 = vmul.f32 0.03125, %v494_v32  ;;  %v519_v36 = vmul.f32 %v6173_v28, %v6173_v28  ;;  %v521_v37 = vmul.f32 %v6175_v29, %v6175_v29 }
  0xa4   : > { %v6183_v38 = vsub.f32 %v472_v8, %v506_v34  ;;  %v6185_v39 = vsub.f32 %v473_v9, %v507_v35  ;;  %v529_v40 = vsel %vm476_vm0, %v519_v36, 0.0  ;;  %v535_v43 = vsel %vm476_vm0, %v521_v37, 0.0 }
  0xa5   : > { %533 = vadd.xlane.f32.xlu0 %v532_v33  ;;  %530 = vadd.xlane.f32.xlu1 %v529_v40  ;;  %v497_v41 = vpop.xlane.xlu0 %496  ;;  %v500_v42 = vpop.xlane.xlu1 %499 }
  0xa6   : > { %v508_v44 = vmul.f32 0.03125, %v497_v41  ;;  %v509_v45 = vmul.f32 0.03125, %v500_v42  ;;  %v522_v46 = vmul.f32 %v6183_v38, %v6183_v38  ;;  %v523_v47 = vmul.f32 %v6185_v39, %v6185_v39 }
  0xa8   : > { %v6193_v48 = vsub.f32 %v474_v12, %v508_v44  ;;  %v6195_v49 = vsub.f32 %v475_v13, %v509_v45  ;;  %v538_v50 = vsel %vm476_vm0, %v522_v46, 0.0  ;;  %v541_v51 = vsel %vm476_vm0, %v523_v47, 0.0 }
  0xa9   : > { %536 = vadd.xlane.f32.xlu1 %v535_v43  ;;  %539 = vadd.xlane.f32.xlu0 %v538_v50 }
  0xaa   : > { %v524_v52 = vmul.f32 %v6193_v48, %v6193_v48  ;;  %v525_v53 = vmul.f32 %v6195_v49, %v6195_v49 }
  0xac   : > { %v544_v54 = vsel %vm476_vm0, %v524_v52, 0.0  ;;  %v547_v55 = vsel %vm476_vm0, %v525_v53, 0.0 }
  0xad   : > { %542 = vadd.xlane.f32.xlu1 %v541_v51  ;;  %545 = vadd.xlane.f32.xlu0 %v544_v54 }
  0xb1   : > { %548 = vadd.xlane.f32.xlu1 %v547_v55 }
 0x12a   : > { %v528_v60 = vpop.xlane.xlu0 %527 }
 0x12b   : > { %v550_v61 = vmul.f32 0.03125, %v528_v60 }
 0x12d   : > { %v558_v62 = vadd.f32 1e-05, %v550_v61 }
 0x12e   : > { %v531_v63 = vpop.xlane.xlu1 %530  ;;  %v534_v0 = vpop.xlane.xlu0 %533 }
 0x12f   : > { %5853 = vrsqrt.f32 %v558_v62  ;;  %v551_v1 = vmul.f32 0.03125, %v531_v63  ;;  %v552_v2 = vmul.f32 0.03125, %v534_v0 }
 0x131   : > { %v559_v3 = vadd.f32 1e-05, %v551_v1  ;;  %v560_v4 = vadd.f32 1e-05, %v552_v2 }
 0x132   : > { %v537_v5 = vpop.xlane.xlu1 %536  ;;  %v540_v6 = vpop.xlane.xlu0 %539 }
 0x133   : > { %5855 = vrsqrt.f32 %v559_v3  ;;  %v553_v7 = vmul.f32 0.03125, %v537_v5  ;;  %v554_v8 = vmul.f32 0.03125, %v540_v6 }
 0x134   : > { %5857 = vrsqrt.f32 %v560_v4 }
 0x135   : > { %v561_v9 = vadd.f32 1e-05, %v553_v7  ;;  %v562_v10 = vadd.f32 1e-05, %v554_v8 }
 0x136   : > { %v543_v11 = vpop.xlane.xlu1 %542  ;;  %v546_v12 = vpop.xlane.xlu0 %545 }
 0x137   : > { %5859 = vrsqrt.f32 %v561_v9  ;;  %v555_v13 = vmul.f32 0.03125, %v543_v11  ;;  %v556_v14 = vmul.f32 0.03125, %v546_v12 }
 0x138   : > { %5861 = vrsqrt.f32 %v562_v10 }
 0x139   : > { %v563_v15 = vadd.f32 1e-05, %v555_v13  ;;  %v564_v16 = vadd.f32 1e-05, %v556_v14 }
 0x13a   : > { %v549_v17 = vpop.xlane.xlu1 %548 }
 0x13b   : > { %5863 = vrsqrt.f32 %v563_v15  ;;  %v557_v18 = vmul.f32 0.03125, %v549_v17 }
 0x13c   : > { %v5854_v19 = vpop.eup %5853  ;;  %5865 = vrsqrt.f32 %v564_v16 }
 0x13d   : > { %v565_v23 = vadd.f32 1e-05, %v557_v18  ;;  %v574_v24 = vmul.f32 %v5854_v19, %v6165_v20 }
 0x13f   : > { %5867 = vrsqrt.f32 %v565_v23  ;;  %v589_v26 = vmul.f32 %v5078_v22, %v574_v24 }
 0x140   : > { %v5856_v27 = vpop.eup %5855 }
 0x141   : > { %v5858_v30 = vpop.eup %5857  ;;  %v604_v31 = vadd.f32 %v5079_v25, %v589_v26  ;;  %v575_v32 = vmul.f32 %v5856_v27, %v6173_v28  ;;  %v764_v27 = vld [vmem:[%s7187_s1] sm:$0xff] }
 0x142   : > { %v576_v33 = vmul.f32 %v5858_v30, %v6167_v21 }
 0x143   : > { %5478 = vmatprep.mubr.msk.f32.mxu0 %vm476_vm0, %v604_v31  ;;  %v590_v34 = vmul.f32 %v5078_v22, %v575_v32 }
 0x144   : > { %v5860_v35 = vpop.eup %5859  ;;  %v591_v36 = vmul.f32 %v5078_v22, %v576_v33 }
 0x145   : > { %v5862_v37 = vpop.eup %5861  ;;  %v605_v20 = vadd.f32 %v5079_v25, %v590_v34  ;;  %v577_v40 = vmul.f32 %v5860_v35, %v6175_v29  ;;  %v767_v34 = vld [vmem:[%s7187_s1 + $0x18] sm:$0xff] }
 0x146   : > { %v606_v41 = vadd.f32 %v5079_v25, %v591_v36  ;;  %v578_v42 = vmul.f32 %v5862_v37, %v6183_v38  ;;  %v766_v37 = vld [vmem:[%s7187_s1 + $0x10] sm:$0xff] }
 0x147   : > { %5479 = vmatmul.mubr.msk.f32.vlgmr.msra.gmra.mxu0 %vm476_vm0, %v605_v20  ;;  %v592_v43 = vmul.f32 %v5078_v22, %v577_v40 }
 0x148   : > { %v5864_v44 = vpop.eup %5863  ;;  %5481 = vmatprep.mubr.msk.f32.mxu0 %vm476_vm0, %v606_v41  ;;  %v593_v28 = vmul.f32 %v5078_v22, %v578_v42  ;;  %v769_v41 = vld [vmem:[%s7187_s1 + $0x28] sm:$0xff] }
 0x149   : > { %v5866_v21 = vpop.eup %5865  ;;  %v607_v45 = vadd.f32 %v5079_v25, %v592_v43  ;;  %v579_v46 = vmul.f32 %v5864_v44, %v6185_v39 }
 0x14a   : > { %v608_v47 = vadd.f32 %v5079_v25, %v593_v28  ;;  %v580_v50 = vmul.f32 %v5866_v21, %v6193_v48  ;;  %v5080_v48 = vld [vmem:[%s7191_s5] ss:$0 sm:$0xff] }
 0x14b   : > { %5482 = vmatmul.mubr.msk.f32.gmra.mxu0 %vm476_vm0, %v607_v45  ;;  %v594_v29 = vmul.f32 %v5078_v22, %v579_v46  ;;  %v768_v28 = vld [vmem:[%s7187_s1 + $0x20] sm:$0xff]  ;;  %v771_v46 = vld [vmem:[%s7187_s1 + $0x38] sm:$0xff] }
 0x14c   : > { %v5868_v51 = vpop.eup %5867  ;;  %5484 = vmatprep.mubr.msk.f32.mxu0 %vm476_vm0, %v608_v47  ;;  %v595_v38 = vmul.f32 %v5078_v22, %v580_v50 }
 0x14d   : > { %v609_v52 = vadd.f32 %v5079_v25, %v594_v29  ;;  %v581_v53 = vmul.f32 %v5868_v51, %v6195_v49 }
 0x14e   : > { %v610_v54 = vadd.f32 %v5079_v25, %v595_v38  ;;  %v770_v38 = vld [vmem:[%s7187_s1 + $0x30] sm:$0xff] }
 0x14f   : > { %5485 = vmatmul.mubr.msk.f32.gmra.mxu0 %vm476_vm0, %v609_v52  ;;  %v596_v55 = vmul.f32 %v5078_v22, %v581_v53 }
 0x150   : > { %5487 = vmatprep.mubr.msk.f32.mxu0 %vm476_vm0, %v610_v54 }
 0x151   : > { %v611_v39 = vadd.f32 %v5079_v25, %v596_v55  ;;  %v765_v25 = vld [vmem:[%s7187_s1 + $0x8] sm:$0xff] }
 0x153   : > { %5488 = vmatmul.mubr.msk.f32.gmra.mxu0 %vm476_vm0, %v611_v39 }
 0x207   : > { %v5480_v56 = vpop.f32.mrf.mxu0 }
 0x208   : > { %v6242_v57 = vadd.f32 %v5480_v56, %v5080_v48 }
 0x209   : > { %v713_v58 = vpop.f32.mrf.mxu0 }
 0x20a   : > { %v6244_v59 = vadd.f32 %v5080_v48, %v713_v58  ;;  %776 = vrot.lane.b32.xlu0 %v6242_v57, %s6045_s21  ;;  %v6282_v12 = vmul.f32 0.35355338, %v6242_v57 }
 0x20b   : > { %v5483_v49 = vpop.f32.mrf.mxu0 }
 0x20c   : > { %774 = vrot.lane.b32.xlu1 %v6244_v59, %s6045_s21  ;;  %v6249_v60 = vmul.f32 0.35355338, %v6244_v59  ;;  %v6251_v62 = vadd.f32 %v5483_v49, %v5080_v48 }
 0x20d   : > { %v723_v61 = vpop.f32.mrf.mxu0 }
 0x20e   : > { %v6253_v63 = vadd.f32 %v5080_v48, %v723_v61  ;;  %5494 = vmatprep.mubr.msk.f32.mxu0 %vm778_vm1, %v6249_v60  ;;  %v6298_v17 = vmul.f32 0.35355338, %v6251_v62 }
 0x20f   : > { %v5486_v0 = vpop.f32.mrf.mxu0 }
 0x210   : > { %v6257_v1 = vadd.f32 %v5486_v0, %v5080_v48  ;;  %868 = vrot.lane.b32.xlu1 %v6251_v62, %s6045_s21  ;;  %v6261_v2 = vmul.f32 0.35355338, %v6253_v63 }
 0x211   : > { %v733_v3 = vpop.f32.mrf.mxu0 }
 0x212   : > { %5501 = vmatprep.mubr.msk.f32.mxu1 %vm778_vm1, %v6261_v2  ;;  %959 = vrot.lane.b32.xlu0 %v6257_v1, %s6045_s21  ;;  %v6269_v6 = vadd.f32 %v5080_v48, %v733_v3  ;;  %v6311_v22 = vmul.f32 0.35355338, %v6257_v1 }
 0x213   : > { %v5489_v4 = vpop.f32.mrf.mxu0 }
 0x214   : > { %v6266_v5 = vadd.f32 %v5489_v4, %v5080_v48  ;;  %866 = vrot.lane.b32.xlu1 %v6253_v63, %s6045_s21  ;;  %v6286_v14 = vmul.f32 0.35355338, %v6269_v6 }
 0x215   : > { %v743_v7 = vpop.f32.mrf.mxu0 }
 0x216   : > { %1050 = vrot.lane.b32.xlu0 %v6266_v5, %s6045_s21  ;;  %v6273_v8 = vadd.f32 %v5080_v48, %v743_v7  ;;  %v6318_v24 = vmul.f32 0.35355338, %v6266_v5 }
 0x218   : > { %957 = vrot.lane.b32.xlu1 %v6269_v6, %s6045_s21  ;;  %v6304_v19 = vmul.f32 0.35355338, %v6273_v8 }
 0x21c   : > { %1048 = vrot.lane.b32.xlu1 %v6273_v8, %s6045_s21  ;;  %s6049_s21 = smov 56  }
 0x27c   : > { %v777_v9 = vpop.permute.xlu0 %776 }
 0x27d   : > { %5490 = vmatprep.subr.msk.mxu0 %vm778_vm1, %v777_v9 }
 0x27e   : > { %v775_v10 = vpop.permute.xlu1 %774  ;;  %5491 = vmatpush3.xpose.msk.msra.mxu0 %vm778_vm1, %v777_v9 }
 0x27f   : > { %5492 = vmatprep.subr.msk.mxu0 %vm778_vm1, %v775_v10 }
 0x282   : > { %v869_v11 = vpop.permute.xlu1 %868  ;;  %5493 = vmatpush3.xpose.msk.msra.mxu0 %vm778_vm1, %v775_v10 }
 0x283   : > { %5497 = vmatprep.subr.msk.mxu1 %vm778_vm1, %v869_v11 }
 0x284   : > { %5498 = vmatpush3.xpose.msk.msra.mxu1 %vm778_vm1, %v869_v11  ;;  %v960_v13 = vpop.permute.xlu0 %959 }
 0x285   : > { %5495 = vmatmul.mubr.msk.f32.vlgmr.msra.gmra.mxu0 %vm778_vm1, %v6282_v12  ;;  %5504 = vmatprep.subr.msk.mxu0 %vm778_vm1, %v960_v13 }
 0x286   : > { %v867_v15 = vpop.permute.xlu1 %866  ;;  %5505 = vmatpush3.xpose.msk.msra.mxu0 %vm778_vm1, %v960_v13  ;;  %5508 = vmatprep.mubr.msk.f32.mxu0 %vm778_vm1, %v6286_v14 }
 0x287   : > { %5499 = vmatprep.subr.msk.mxu1 %vm778_vm1, %v867_v15 }
 0x288   : > { %5500 = vmatpush3.xpose.msk.msra.mxu1 %vm778_vm1, %v867_v15  ;;  %v1051_v16 = vpop.permute.xlu0 %1050 }
 0x289   : > { %5511 = vmatprep.subr.msk.mxu1 %vm778_vm1, %v1051_v16 }
 0x28a   : > { %v958_v18 = vpop.permute.xlu1 %957 }
 0x28b   : > { %5502 = vmatmul.mubr.msk.f32.vlgmr.msra.gmra.mxu1 %vm778_vm1, %v6298_v17  ;;  %5506 = vmatprep.subr.msk.mxu0 %vm778_vm1, %v958_v18 }
 0x28c   : > { %5507 = vmatpush3.xpose.msk.msra.mxu0 %vm778_vm1, %v958_v18  ;;  %5512 = vmatpush3.xpose.msk.msra.mxu1 %vm778_vm1, %v1051_v16 }
 0x28d   : > { %5515 = vmatprep.mubr.msk.f32.mxu1 %vm778_vm1, %v6304_v19 }
 0x28e   : > { %v1049_v23 = vpop.permute.xlu1 %1048 }
 0x28f   : > { %5509 = vmatmul.mubr.msk.f32.vlgmr.msra.gmra.mxu0 %vm778_vm1, %v6311_v22  ;;  %5513 = vmatprep.subr.msk.mxu1 %vm778_vm1, %v1049_v23 }
 0x290   : > { %5514 = vmatpush3.xpose.msk.msra.mxu1 %vm778_vm1, %v1049_v23 }
 0x293   : > { %5516 = vmatmul.mubr.msk.f32.vlgmr.msra.gmra.mxu1 %vm778_vm1, %v6318_v24 }
 0x345   : > { %v5496_v26 = vpop.f32.mrf.mxu0 }
 0x346   : > { %v861_v30 = vadd.f32 %v5496_v26, %v765_v25 }
 0x347   : > { %v855_v31 = vpop.f32.mrf.mxu0 }
 0x348   : > { %v856_v32 = vadd.f32 %v855_v31, %v764_v27  ;;  %v1141_v33 = vsel %vm1137_vm2, %v861_v30, -inf }
 0x349   : > { %1142 = vmax.xlane.f32.xlu1 %v1141_v33 }
 0x34a   : > { %v1138_v35 = vsel %vm1137_vm2, %v856_v32, -inf }
 0x34b   : > { %v5503_v36 = vpop.f32.mrf.mxu1  ;;  %1139 = vmax.xlane.f32.xlu0 %v1138_v35 }
 0x34c   : > { %v952_v20 = vadd.f32 %v5503_v36, %v767_v34 }
 0x34d   : > { %v946_v40 = vpop.f32.mrf.mxu1 }
 0x34e   : > { %v947_v42 = vadd.f32 %v946_v40, %v766_v37  ;;  %v1147_v43 = vsel %vm1137_vm2, %v952_v20, -inf }
 0x34f   : > { %1148 = vmax.xlane.f32.xlu0 %v1147_v43  ;;  %v5510_v44 = vpop.f32.mrf.mxu0 }
 0x350   : > { %v1043_v21 = vadd.f32 %v5510_v44, %v769_v41  ;;  %v1144_v50 = vsel %vm1137_vm2, %v947_v42, -inf }
 0x351   : > { %v1037_v45 = vpop.f32.mrf.mxu0 }
 0x352   : > { %v1038_v47 = vadd.f32 %v1037_v45, %v768_v28  ;;  %v1153_v29 = vsel %vm1137_vm2, %v1043_v21, -inf }
 0x353   : > { %1145 = vmax.xlane.f32.xlu0 %v1144_v50  ;;  %1154 = vmax.xlane.f32.xlu1 %v1153_v29  ;;  %v5517_v51 = vpop.f32.mrf.mxu1 }
 0x354   : > { %v1134_v52 = vadd.f32 %v5517_v51, %v771_v46  ;;  %v1150_v55 = vsel %vm1137_vm2, %v1038_v47, -inf }
 0x355   : > { %v1128_v53 = vpop.f32.mrf.mxu1 }
 0x356   : > { %v1129_v54 = vadd.f32 %v1128_v53, %v770_v38  ;;  %v1159_v39 = vsel %vm1137_vm2, %v1134_v52, -inf }
 0x357   : > { %1151 = vmax.xlane.f32.xlu0 %v1150_v55  ;;  %1160 = vmax.xlane.f32.xlu1 %v1159_v39 }
 0x358   : > { %v1156_v48 = vsel %vm1137_vm2, %v1129_v54, -inf }
 0x35b   : > { %1157 = vmax.xlane.f32.xlu0 %v1156_v48 }
 0x368   : > { %1226 = vrot.lane.b32.xlu1 %v6244_v59, %s6046_s26 }
 0x36c   : > { %1315 = vrot.lane.b32.xlu1 %v6251_v62, %s6046_s26 }
 0x370   : > { %1313 = vrot.lane.b32.xlu1 %v6253_v63, %s6046_s26 }
 0x371   : > { %1228 = vrot.lane.b32.xlu0 %v6242_v57, %s6046_s26 }
 0x374   : > { %1400 = vrot.lane.b32.xlu1 %v6269_v6, %s6046_s26 }
 0x375   : > { %1402 = vrot.lane.b32.xlu0 %v6257_v1, %s6046_s26 }
 0x378   : > { %1589 = vrot.lane.b32.xlu1 %v6242_v57, %s6047_s27 }
 0x379   : > { %1489 = vrot.lane.b32.xlu0 %v6266_v5, %s6046_s26 }
 0x37c   : > { %1587 = vrot.lane.b32.xlu1 %v6244_v59, %s6047_s27 }
 0x37d   : > { %1487 = vrot.lane.b32.xlu0 %v6273_v8, %s6046_s26 }
 0x380   : > { %1583 = vrot.lane.b32.xlu1 %v6249_v60, %s6048_s28 }
 0x381   : > { %1680 = vrot.lane.b32.xlu0 %v6251_v62, %s6047_s27 }
 0x384   : > { %1678 = vrot.lane.b32.xlu1 %v6253_v63, %s6047_s27 }
 0x385   : > { %1585 = vrot.lane.b32.xlu0 %v6282_v12, %s6048_s28 }
 0x388   : > { %1674 = vrot.lane.b32.xlu1 %v6261_v2, %s6048_s28 }
 0x389   : > { %1771 = vrot.lane.b32.xlu0 %v6257_v1, %s6047_s27 }
 0x3d2   : > { %v1143_v56 = vpop.xlane.xlu1 %1142 }
 0x3d3   : > { %v1163_v58 = vsub.f32 %v861_v30, %v1143_v56 }
 0x3d4   : > { %v1140_v49 = vpop.xlane.xlu0 %1139 }
 0x3d5   : > { %v1172_v61 = vmul.f32 1.442695, %v1163_v58  ;;  %v1162_v0 = vsub.f32 %v856_v32, %v1140_v49 }
 0x3d7   : > { %5869 = vpow2.f32 %v1172_v61  ;;  %v1170_v3 = vmul.f32 1.442695, %v1162_v0 }
 0x3d8   : > { %v1149_v4 = vpop.xlane.xlu0 %1148 }
 0x3d9   : > { %5871 = vpow2.f32 %v1170_v3  ;;  %v1165_v7 = vsub.f32 %v952_v20, %v1149_v4 }
 0x3db   : > { %v1176_v9 = vmul.f32 1.442695, %v1165_v7 }
 0x3dc   : > { %v1155_v10 = vpop.xlane.xlu1 %1154  ;;  %v1146_v11 = vpop.xlane.xlu0 %1145 }
 0x3dd   : > { %5873 = vpow2.f32 %v1176_v9  ;;  %v1167_v13 = vsub.f32 %v1043_v21, %v1155_v10  ;;  %v1164_v15 = vsub.f32 %v947_v42, %v1146_v11 }
 0x3df   : > { %v1180_v16 = vmul.f32 1.442695, %v1167_v13  ;;  %v1174_v18 = vmul.f32 1.442695, %v1164_v15 }
 0x3e0   : > { %v1161_v23 = vpop.xlane.xlu1 %1160  ;;  %v1152_v25 = vpop.xlane.xlu0 %1151 }
 0x3e1   : > { %5875 = vpow2.f32 %v1180_v16  ;;  %v1169_v26 = vsub.f32 %v1134_v52, %v1161_v23  ;;  %v1166_v27 = vsub.f32 %v1038_v47, %v1152_v25 }
 0x3e2   : > { %5877 = vpow2.f32 %v1174_v18 }
 0x3e3   : > { %v1184_v30 = vmul.f32 1.442695, %v1169_v26  ;;  %v1178_v31 = vmul.f32 1.442695, %v1166_v27 }
 0x3e4   : > { %v6378_v32 = vpop.eup %5869  ;;  %v1158_v33 = vpop.xlane.xlu0 %1157 }
 0x3e5   : > { %5879 = vpow2.f32 %v1184_v30  ;;  %v1168_v34 = vsub.f32 %v1129_v54, %v1158_v33  ;;  %v1189_v35 = vsel %vm1137_vm2, %v6378_v32, 0.0  ;;  %v1227_v37 = vpop.permute.xlu1 %1226 }
 0x3e6   : > { %v6382_v36 = vpop.eup %5871  ;;  %5881 = vpow2.f32 %v1178_v31  ;;  %1190 = vadd.xlane.f32.xlu1 %v1189_v35 }
 0x3e7   : > { %v1182_v20 = vmul.f32 1.442695, %v1168_v34  ;;  %v1186_v40 = vsel %vm1137_vm2, %v6382_v36, 0.0 }
 0x3e8   : > { %1187 = vadd.xlane.f32.xlu0 %v1186_v40  ;;  %v1229_v41 = vpop.permute.xlu0 %1228 }
 0x3e9   : > { %5883 = vpow2.f32 %v1182_v20  ;;  %5518 = vmatprep.subr.mxu0 %v1229_v41  ;;  %v6390_v44 = vpop.permute.xlu1 %1315 }
 0x3ea   : > { %v6386_v42 = vpop.eup %5873  ;;  %5519 = vmatpush3.msra.mxu0 %v1229_v41 }
 0x3eb   : > { %5520 = vmatprep.subr.mxu0 %v1227_v37  ;;  %v1195_v43 = vsel %vm1137_vm2, %v6386_v42, 0.0 }
 0x3ec   : > { %1196 = vadd.xlane.f32.xlu1 %v1195_v43  ;;  %5521 = vmatpush3.msra.mxu0 %v1227_v37  ;;  %v6392_v28 = vpop.permute.xlu0 %1402 }
 0x3ed   : > { %5525 = vmatprep.subr.mxu0 %v6390_v44  ;;  %v1314_v48 = vpop.permute.xlu1 %1313 }
 0x3ee   : > { %v6395_v21 = vpop.eup %5875 }
 0x3ef   : > { %v6397_v45 = vpop.eup %5877  ;;  %v1201_v46 = vsel %vm1137_vm2, %v6395_v21, 0.0 }
 0x3f0   : > { %1202 = vadd.xlane.f32.xlu1 %v1201_v46  ;;  %v1192_v47 = vsel %vm1137_vm2, %v6397_v45, 0.0  ;;  %v1490_v50 = vpop.permute.xlu0 %1489 }
 0x3f1   : > { %1193 = vadd.xlane.f32.xlu0 %v1192_v47  ;;  %5539 = vmatprep.subr.mxu1 %v1490_v50  ;;  %v1401_v56 = vpop.permute.xlu1 %1400 }
 0x3f2   : > { %v6403_v29 = vpop.eup %5879  ;;  %5540 = vmatpush3.msra.mxu1 %v1490_v50 }
 0x3f3   : > { %v6405_v51 = vpop.eup %5881  ;;  %v1207_v38 = vsel %vm1137_vm2, %v6403_v29, 0.0 }
 0x3f4   : > { %1208 = vadd.xlane.f32.xlu1 %v1207_v38  ;;  %v1198_v52 = vsel %vm1137_vm2, %v6405_v51, 0.0  ;;  %v1488_v53 = vpop.permute.xlu0 %1487 }
 0x3f5   : > { %1199 = vadd.xlane.f32.xlu0 %v1198_v52  ;;  %5541 = vmatprep.subr.mxu1 %v1488_v53  ;;  %v1590_v58 = vpop.permute.xlu1 %1589 }
 0x3f6   : > { %v6411_v54 = vpop.eup %5883  ;;  %5542 = vmatpush3.msra.mxu1 %v1488_v53 }
 0x3f7   : > { %v1204_v55 = vsel %vm1137_vm2, %v6411_v54, 0.0 }
 0x3f8   : > { %v6415_v39 = vpop.permute.xlu0 %1680 }
 0x3f9   : > { %1205 = vadd.xlane.f32.xlu0 %v1204_v55  ;;  %5553 = vmatprep.subr.msk.mxu1 %vm778_vm1, %v6415_v39  ;;  %v1588_v49 = vpop.permute.xlu1 %1587 }
 0x3fc   : > { %v6437_v3 = vpop.permute.xlu0 %1585 }
 0x3fd   : > { %v1584_v61 = vpop.permute.xlu1 %1583 }
 0x400   : > { %v6439_v7 = vpop.permute.xlu0 %1771 }
 0x401   : > { %v6435_v0 = vpop.permute.xlu1 %1678 }
 0x405   : > { %1769 = vrot.lane.b32.xlu1 %v6269_v6, %s6047_s27  ;;  %v1675_v4 = vpop.permute.xlu1 %1674 }
 0x409   : > { %1765 = vrot.lane.b32.xlu1 %v6286_v14, %s6048_s28 }
 0x40d   : > { %1860 = vrot.lane.b32.xlu1 %v6273_v8, %s6047_s27 }
 0x40f   : > { %1676 = vrot.lane.b32.xlu0 %v6298_v17, %s6048_s28 }
 0x411   : > { %1858 = vrot.lane.b32.xlu1 %v6318_v24, %s6048_s28 }
 0x413   : > { %1862 = vrot.lane.b32.xlu0 %v6266_v5, %s6047_s27 }
 0x417   : > { %1767 = vrot.lane.b32.xlu0 %v6311_v22, %s6048_s28 }
 0x41b   : > { %1856 = vrot.lane.b32.xlu0 %v6304_v19, %s6048_s28 }
 0x46f   : > { %v1191_v9 = vpop.xlane.xlu1 %1190 }
 0x470   : > { %5885 = vrcp.f32 %v1191_v9 }
 0x471   : > { %v1188_v10 = vpop.xlane.xlu0 %1187 }
 0x472   : > { %5887 = vrcp.f32 %v1188_v10 }
 0x475   : > { %v1197_v11 = vpop.xlane.xlu1 %1196 }
 0x476   : > { %5889 = vrcp.f32 %v1197_v11 }
 0x479   : > { %v1203_v13 = vpop.xlane.xlu1 %1202 }
 0x47a   : > { %v1194_v15 = vpop.xlane.xlu0 %1193 }
 0x47b   : > { %5891 = vrcp.f32 %v1194_v15  ;;  %v5115_v15 = vld [vmem:[%s7187_s1 + $0x50] sm:$0xff] }
 0x47c   : > { %5893 = vrcp.f32 %v1203_v13 }
 0x47d   : > { %v5886_v16 = vpop.eup %5885  ;;  %v1209_v25 = vpop.xlane.xlu1 %1208 }
 0x47e   : > { %v1200_v18 = vpop.xlane.xlu0 %1199  ;;  %v1219_v27 = vmul.f32 %v5886_v16, %v6378_v32  ;;  %v5118_v16 = vld [vmem:[%s7187_s1 + $0x68] sm:$0xff] }
 0x47f   : > { %v5888_v23 = vpop.eup %5887  ;;  %5895 = vrcp.f32 %v1200_v18 }
 0x480   : > { %v1218_v26 = vmul.f32 %v5888_v23, %v6382_v36  ;;  %5897 = vrcp.f32 %v1209_v25 }
 0x482   : > { %v1206_v30 = vpop.xlane.xlu0 %1205  ;;  %5522 = vmatprep.mubr.msk.f32.mxu0 %vm1137_vm2, %v1218_v26 }
 0x483   : > { %5899 = vrcp.f32 %v1206_v30  ;;  %5523 = vmatmul.mubr.msk.f32.vlgmr.msra.gmra.mxu0 %vm1137_vm2, %v1219_v27  ;;  %v5890_v31 = vpop.eup %5889  ;;  %v5117_v30 = vld [vmem:[%s7187_s1 + $0x60] sm:$0xff] }
 0x484   : > { %5526 = vmatpush3.msra.mxu0 %v6390_v44  ;;  %v1221_v35 = vmul.f32 %v5890_v31, %v6386_v42  ;;  %v1770_v42 = vpop.permute.xlu1 %1769  ;;  %v5120_v31 = vld [vmem:[%s7187_s1 + $0x78] sm:$0xff] }
 0x485   : > { %5527 = vmatprep.subr.mxu0 %v1314_v48 }
 0x486   : > { %5528 = vmatpush3.msra.mxu0 %v1314_v48  ;;  %v1677_v36 = vpop.permute.xlu0 %1676  ;;  %v5114_v48 = vld [vmem:[%s7187_s1 + $0x48] sm:$0xff] }
 0x487   : > { %5532 = vmatprep.subr.mxu0 %v6392_v28 }
 0x488   : > { %v5892_v33 = vpop.eup %5891 }
 0x489   : > { %v1220_v34 = vmul.f32 %v5892_v33, %v6397_v45  ;;  %v5894_v32 = vpop.eup %5893  ;;  %v1766_v45 = vpop.permute.xlu1 %1765 }
 0x48a   : > { %v1223_v40 = vmul.f32 %v5894_v32, %v6395_v21  ;;  %v1863_v44 = vpop.permute.xlu0 %1862 }
 0x48b   : > { %5529 = vmatprep.mubr.msk.f32.mxu0 %vm1137_vm2, %v1220_v34 }
 0x48c   : > { %v5896_v37 = vpop.eup %5895  ;;  %5530 = vmatmul.mubr.msk.f32.vlgmr.msra.gmra.mxu0 %vm1137_vm2, %v1221_v35 }
 0x48d   : > { %5533 = vmatpush3.msra.mxu0 %v6392_v28  ;;  %v1222_v20 = vmul.f32 %v5896_v37, %v6405_v51  ;;  %v5898_v41 = vpop.eup %5897  ;;  %v1861_v47 = vpop.permute.xlu1 %1860 }
 0x48e   : > { %5534 = vmatprep.subr.mxu0 %v1401_v56  ;;  %v1225_v21 = vmul.f32 %v5898_v41, %v6403_v29  ;;  %v1768_v46 = vpop.permute.xlu0 %1767 }
 0x48f   : > { %5535 = vmatpush3.msra.mxu0 %v1401_v56  ;;  %5536 = vmatprep.mubr.msk.f32.mxu0 %vm1137_vm2, %v1222_v20  ;;  %v5119_v20 = vld [vmem:[%s7187_s1 + $0x70] sm:$0xff] }
 0x490   : > { %v5900_v43 = vpop.eup %5899  ;;  %5546 = vmatprep.subr.msk.mxu0 %vm778_vm1, %v1590_v58  ;;  %5537 = vmatmul.mubr.msk.f32.vlgmr.msra.gmra.mxu0 %vm1137_vm2, %v1223_v40 }
 0x491   : > { %5547 = vmatpush3.xpose.msk.msra.mxu0 %vm778_vm1, %v1590_v58  ;;  %5550 = vmatprep.mubr.msk.f32.mxu0 %vm778_vm1, %v1584_v61  ;;  %v1224_v28 = vmul.f32 %v5900_v43, %v6411_v54  ;;  %v1859_v29 = vpop.permute.xlu1 %1858  ;;  %v5113_v58 = vld [vmem:[%s7187_s1 + $0x40] sm:$0xff] }
 0x492   : > { %5548 = vmatprep.subr.msk.mxu0 %vm778_vm1, %v1588_v49  ;;  %v1857_v50 = vpop.permute.xlu0 %1856 }
 0x493   : > { %5543 = vmatprep.mubr.msk.f32.mxu1 %vm1137_vm2, %v1224_v28 }
 0x494   : > { %5544 = vmatmul.mubr.msk.f32.vlgmr.msra.gmra.mxu1 %vm1137_vm2, %v1225_v21 }
 0x495   : > { %5549 = vmatpush3.xpose.msk.msra.mxu0 %vm778_vm1, %v1588_v49  ;;  %5554 = vmatpush3.xpose.msk.msra.mxu1 %vm778_vm1, %v6415_v39 }
 0x496   : > { %5555 = vmatprep.subr.msk.mxu1 %vm778_vm1, %v6435_v0  ;;  %5557 = vmatprep.mubr.msk.f32.mxu1 %vm778_vm1, %v1675_v4 }
 0x497   : > { %5560 = vmatprep.subr.msk.mxu0 %vm778_vm1, %v6439_v7 }
 0x498   : > { %5551 = vmatmul.mubr.msk.f32.vlgmr.msra.gmra.mxu0 %vm778_vm1, %v6437_v3  ;;  %v5116_v3 = vld [vmem:[%s7187_s1 + $0x58] sm:$0xff] }
 0x499   : > { %5556 = vmatpush3.xpose.msk.msra.mxu1 %vm778_vm1, %v6435_v0  ;;  %5561 = vmatpush3.xpose.msk.msra.mxu0 %vm778_vm1, %v6439_v7 }
 0x49a   : > { %5564 = vmatprep.mubr.msk.f32.mxu0 %vm778_vm1, %v1766_v45  ;;  %5562 = vmatprep.subr.msk.mxu0 %vm778_vm1, %v1770_v42 }
 0x49b   : > { %5567 = vmatprep.subr.msk.mxu1 %vm778_vm1, %v1863_v44 }
 0x49c   : > { %5558 = vmatmul.mubr.msk.f32.vlgmr.msra.gmra.mxu1 %vm778_vm1, %v1677_v36 }
 0x49d   : > { %5563 = vmatpush3.xpose.msk.msra.mxu0 %vm778_vm1, %v1770_v42  ;;  %5568 = vmatpush3.xpose.msk.msra.mxu1 %vm778_vm1, %v1863_v44 }
 0x49e   : > { %5571 = vmatprep.mubr.msk.f32.mxu1 %vm778_vm1, %v1857_v50  ;;  %5569 = vmatprep.subr.msk.mxu1 %vm778_vm1, %v1861_v47 }
 0x4a0   : > { %5565 = vmatmul.mubr.msk.f32.vlgmr.msra.gmra.mxu0 %vm778_vm1, %v1768_v46 }
 0x4a1   : > { %5570 = vmatpush3.xpose.msk.msra.mxu1 %vm778_vm1, %v1861_v47 }
 0x4a4   : > { %5572 = vmatmul.mubr.msk.f32.vlgmr.msra.gmra.mxu1 %vm778_vm1, %v1859_v29 }
 0x543   : > { %v6489_v51 = vpop.f32.mrf.mxu0 }
 0x545   : > { %v6491_v38 = vpop.f32.mrf.mxu0 }
 0x54c   : > { %v6493_v52 = vpop.f32.mrf.mxu0 }
 0x54e   : > { %v6495_v53 = vpop.f32.mrf.mxu0 }
 0x550   : > { %v6497_v54 = vpop.f32.mrf.mxu0 }
 0x552   : > { %v6499_v55 = vpop.f32.mrf.mxu0 }
 0x554   : > { %v6501_v39 = vpop.f32.mrf.mxu1 }
 0x556   : > { %v6509_v61 = vpop.f32.mrf.mxu1 }
 0x558   : > { %v5552_v56 = vpop.f32.mrf.mxu0 }
 0x559   : > { %v1671_v49 = vadd.f32 %v5552_v56, %v5114_v48 }
 0x55a   : > { %v1665_v0 = vpop.f32.mrf.mxu0 }
 0x55b   : > { %v1666_v4 = vadd.f32 %v5113_v58, %v1665_v0  ;;  %v1950_v7 = vsel %vm1137_vm2, %v1671_v49, -inf }
 0x55c   : > { %1951 = vmax.xlane.f32.xlu1 %v1950_v7  ;;  %v5559_v9 = vpop.f32.mrf.mxu1 }
 0x55d   : > { %v1762_v10 = vadd.f32 %v5559_v9, %v5116_v3  ;;  %v1947_v11 = vsel %vm1137_vm2, %v1666_v4, -inf }
 0x55e   : > { %1948 = vmax.xlane.f32.xlu0 %v1947_v11  ;;  %v1756_v13 = vpop.f32.mrf.mxu1 }
 0x55f   : > { %v1757_v23 = vadd.f32 %v5115_v15, %v1756_v13  ;;  %v1956_v26 = vsel %vm1137_vm2, %v1762_v10, -inf }
 0x560   : > { %v5566_v18 = vpop.f32.mrf.mxu0 }
 0x561   : > { %v1853_v25 = vadd.f32 %v5566_v18, %v5118_v16  ;;  %v1953_v36 = vsel %vm1137_vm2, %v1757_v23, -inf }
 0x562   : > { %1957 = vmax.xlane.f32.xlu0 %v1956_v26  ;;  %v1847_v27 = vpop.f32.mrf.mxu0 }
 0x563   : > { %v1962_v33 = vsel %vm1137_vm2, %v1853_v25, -inf  ;;  %v1848_v35 = vadd.f32 %v5117_v30, %v1847_v27 }
 0x564   : > { %1963 = vmax.xlane.f32.xlu1 %v1962_v33  ;;  %v5573_v34 = vpop.f32.mrf.mxu1 }
 0x565   : > { %v1944_v32 = vadd.f32 %v5573_v34, %v5120_v31  ;;  %v1959_v43 = vsel %vm1137_vm2, %v1848_v35, -inf }
 0x566   : > { %1954 = vmax.xlane.f32.xlu0 %v1953_v36  ;;  %v1938_v37 = vpop.f32.mrf.mxu1 }
 0x567   : > { %v1968_v40 = vsel %vm1137_vm2, %v1944_v32, -inf  ;;  %v1939_v41 = vadd.f32 %v5119_v20, %v1938_v37 }
 0x568   : > { %1969 = vmax.xlane.f32.xlu1 %v1968_v40 }
 0x569   : > { %v1965_v42 = vsel %vm1137_vm2, %v1939_v41, -inf }
 0x56a   : > { %1960 = vmax.xlane.f32.xlu0 %v1959_v43 }
 0x56e   : > { %1966 = vmax.xlane.f32.xlu0 %v1965_v42 }
 0x579   : > { %2035 = vrot.lane.b32.xlu1 %v6244_v59, %s6049_s21 }
 0x57d   : > { %2124 = vrot.lane.b32.xlu1 %v6251_v62, %s6049_s21 }
 0x581   : > { %2122 = vrot.lane.b32.xlu1 %v6253_v63, %s6049_s21 }
 0x584   : > { %2037 = vrot.lane.b32.xlu0 %v6242_v57, %s6049_s21 }
 0x585   : > { %2209 = vrot.lane.b32.xlu1 %v6269_v6, %s6049_s21 }
 0x588   : > { %2211 = vrot.lane.b32.xlu0 %v6257_v1, %s6049_s21 }
 0x5e5   : > { %v1952_v44 = vpop.xlane.xlu1 %1951 }
 0x5e6   : > { %v1972_v28 = vsub.f32 %v1671_v49, %v1952_v44 }
 0x5e7   : > { %v1949_v21 = vpop.xlane.xlu0 %1948 }
 0x5e8   : > { %v1981_v45 = vmul.f32 1.442695, %v1972_v28  ;;  %v1971_v46 = vsub.f32 %v1666_v4, %v1949_v21 }
 0x5ea   : > { %5901 = vpow2.f32 %v1981_v45  ;;  %v1979_v47 = vmul.f32 1.442695, %v1971_v46 }
 0x5eb   : > { %v1958_v50 = vpop.xlane.xlu0 %1957 }
 0x5ec   : > { %5903 = vpow2.f32 %v1979_v47  ;;  %v1974_v29 = vsub.f32 %v1762_v10, %v1958_v50 }
 0x5ed   : > { %v1964_v48 = vpop.xlane.xlu1 %1963 }
 0x5ee   : > { %v1985_v56 = vmul.f32 1.442695, %v1974_v29  ;;  %v1976_v58 = vsub.f32 %v1853_v25, %v1964_v48 }
 0x5ef   : > { %v1955_v0 = vpop.xlane.xlu0 %1954 }
 0x5f0   : > { %5905 = vpow2.f32 %v1985_v56  ;;  %v1989_v3 = vmul.f32 1.442695, %v1976_v58  ;;  %v1973_v7 = vsub.f32 %v1757_v23, %v1955_v0 }
 0x5f1   : > { %v1970_v9 = vpop.xlane.xlu1 %1969 }
 0x5f2   : > { %5907 = vpow2.f32 %v1989_v3  ;;  %v1983_v11 = vmul.f32 1.442695, %v1973_v7  ;;  %v1978_v13 = vsub.f32 %v1944_v32, %v1970_v9 }
 0x5f3   : > { %v1961_v49 = vpop.xlane.xlu0 %1960 }
 0x5f4   : > { %5909 = vpow2.f32 %v1983_v11  ;;  %v1993_v15 = vmul.f32 1.442695, %v1978_v13  ;;  %v1975_v4 = vsub.f32 %v1848_v35, %v1961_v49 }
 0x5f5   : > { %v2036_v16 = vpop.permute.xlu1 %2035 }
 0x5f6   : > { %5911 = vpow2.f32 %v1993_v15  ;;  %v1987_v18 = vmul.f32 1.442695, %v1975_v4  ;;  %v753_v4 = vld [vmem:[%s7192_s6 + $0x8] sm:$0xff] }
 0x5f7   : > { %v6549_v26 = vpop.eup %5901  ;;  %v1967_v10 = vpop.xlane.xlu0 %1966 }
 0x5f8   : > { %5913 = vpow2.f32 %v1987_v18  ;;  %v1977_v25 = vsub.f32 %v1939_v41, %v1967_v10  ;;  %v1998_v27 = vsel %vm1137_vm2, %v6549_v26, 0.0 }
 0x5f9   : > { %v6553_v23 = vpop.eup %5903  ;;  %1999 = vadd.xlane.f32.xlu1 %v1998_v27  ;;  %v2125_v30 = vpop.permute.xlu1 %2124 }
 0x5fa   : > { %v1991_v31 = vmul.f32 1.442695, %v1977_v25  ;;  %5581 = vmatprep.subr.mxu1 %v2125_v30  ;;  %v1995_v33 = vsel %vm1137_vm2, %v6553_v23, 0.0 }
 0x5fb   : > { %5582 = vmatpush3.msra.mxu1 %v2125_v30  ;;  %1996 = vadd.xlane.f32.xlu0 %v1995_v33  ;;  %v2038_v34 = vpop.permute.xlu0 %2037 }
 0x5fc   : > { %5915 = vpow2.f32 %v1991_v31  ;;  %5574 = vmatprep.subr.mxu0 %v2038_v34 }
 0x5fd   : > { %v6557_v35 = vpop.eup %5905  ;;  %v2123_v32 = vpop.permute.xlu1 %2122  ;;  %5575 = vmatpush3.msra.mxu0 %v2038_v34 }
 0x5fe   : > { %5576 = vmatprep.subr.mxu0 %v2036_v16  ;;  %5583 = vmatprep.subr.mxu1 %v2123_v32  ;;  %v2004_v36 = vsel %vm1137_vm2, %v6557_v35, 0.0 }
 0x5ff   : > { %v6561_v37 = vpop.eup %5907  ;;  %5584 = vmatpush3.msra.mxu1 %v2123_v32  ;;  %2005 = vadd.xlane.f32.xlu1 %v2004_v36  ;;  %v2212_v20 = vpop.permute.xlu0 %2211  ;;  %v752_v36 = vld [vmem:[%s7192_s6] sm:$0xff] }
 0x600   : > { %5577 = vmatpush3.msra.mxu0 %v2036_v16  ;;  %v2010_v41 = vsel %vm1137_vm2, %v6561_v37, 0.0 }
 0x601   : > { %v6563_v40 = vpop.eup %5909  ;;  %5588 = vmatprep.subr.mxu0 %v2212_v20  ;;  %v2210_v47 = vpop.permute.xlu1 %2209 }
 0x602   : > { %v2001_v43 = vsel %vm1137_vm2, %v6563_v40, 0.0 }
 0x603   : > { %v6569_v42 = vpop.eup %5911  ;;  %2011 = vadd.xlane.f32.xlu1 %v2010_v41  ;;  %2002 = vadd.xlane.f32.xlu0 %v2001_v43 }
 0x604   : > { %v2016_v28 = vsel %vm1137_vm2, %v6569_v42, 0.0 }
 0x605   : > { %v6571_v44 = vpop.eup %5913 }
 0x606   : > { %v2007_v21 = vsel %vm1137_vm2, %v6571_v44, 0.0 }
 0x607   : > { %2017 = vadd.xlane.f32.xlu1 %v2016_v28  ;;  %2008 = vadd.xlane.f32.xlu0 %v2007_v21 }
 0x609   : > { %v6577_v45 = vpop.eup %5915 }
 0x60a   : > { %v2013_v46 = vsel %vm1137_vm2, %v6577_v45, 0.0 }
 0x60b   : > { %2014 = vadd.xlane.f32.xlu0 %v2013_v46 }
 0x618   : > { %2296 = vrot.lane.b32.xlu1 %v6273_v8, %s6049_s21 }
 0x61c   : > { %2654 = vrot.lane.b32.xlu1 %v6244_v59, %s6050_s22 }
 0x620   : > { %2650 = vrot.lane.b32.xlu1 %v6249_v60, %s6051_s23 }
 0x621   : > { %2298 = vrot.lane.b32.xlu0 %v6266_v5, %s6049_s21  ;;  %s6053_s21 = smov 72  }
 0x624   : > { %2745 = vrot.lane.b32.xlu1 %v6253_v63, %s6050_s22 }
 0x625   : > { %2656 = vrot.lane.b32.xlu0 %v6242_v57, %s6050_s22 }
 0x628   : > { %2741 = vrot.lane.b32.xlu1 %v6261_v2, %s6051_s23 }
 0x629   : > { %2747 = vrot.lane.b32.xlu0 %v6251_v62, %s6050_s22 }
 0x62c   : > { %2836 = vrot.lane.b32.xlu1 %v6269_v6, %s6050_s22 }
 0x62d   : > { %2652 = vrot.lane.b32.xlu0 %v6282_v12, %s6051_s23 }
 0x630   : > { %2832 = vrot.lane.b32.xlu1 %v6286_v14, %s6051_s23 }
 0x631   : > { %2838 = vrot.lane.b32.xlu0 %v6257_v1, %s6050_s22 }
 0x634   : > { %2927 = vrot.lane.b32.xlu1 %v6273_v8, %s6050_s22 }
 0x635   : > { %2743 = vrot.lane.b32.xlu0 %v6298_v17, %s6051_s23 }
 0x638   : > { %2925 = vrot.lane.b32.xlu1 %v6318_v24, %s6051_s23 }
 0x639   : > { %2929 = vrot.lane.b32.xlu0 %v6266_v5, %s6050_s22  ;;  %s6054_s22 = smov 104  }
 0x63d   : > { %2834 = vrot.lane.b32.xlu0 %v6311_v22, %s6051_s23 }
 0x641   : > { %2923 = vrot.lane.b32.xlu0 %v6304_v19, %s6051_s23 }
 0x682   : > { %v2000_v50 = vpop.xlane.xlu1 %1999 }
 0x683   : > { %5917 = vrcp.f32 %v2000_v50 }
 0x684   : > { %v1997_v29 = vpop.xlane.xlu0 %1996 }
 0x685   : > { %5919 = vrcp.f32 %v1997_v29 }
 0x688   : > { %v2006_v48 = vpop.xlane.xlu1 %2005 }
 0x689   : > { %5921 = vrcp.f32 %v2006_v48 }
 0x68c   : > { %v2012_v56 = vpop.xlane.xlu1 %2011  ;;  %v2003_v58 = vpop.xlane.xlu0 %2002 }
 0x68d   : > { %5923 = vrcp.f32 %v2003_v58 }
 0x68e   : > { %5925 = vrcp.f32 %v2012_v56 }
 0x690   : > { %v2018_v0 = vpop.xlane.xlu1 %2017  ;;  %v2009_v3 = vpop.xlane.xlu0 %2008 }
 0x691   : > { %v5918_v7 = vpop.eup %5917  ;;  %5927 = vrcp.f32 %v2009_v3 }
 0x692   : > { %v5920_v9 = vpop.eup %5919  ;;  %5929 = vrcp.f32 %v2018_v0  ;;  %v2028_v15 = vmul.f32 %v5918_v7, %v6549_v26 }
 0x693   : > { %v2027_v11 = vmul.f32 %v5920_v9, %v6553_v23 }
 0x694   : > { %v2297_v13 = vpop.permute.xlu1 %2296  ;;  %v2015_v49 = vpop.xlane.xlu0 %2014 }
 0x695   : > { %5931 = vrcp.f32 %v2015_v49  ;;  %5578 = vmatprep.mubr.msk.f32.mxu0 %vm1137_vm2, %v2027_v11 }
 0x696   : > { %5579 = vmatmul.mubr.msk.f32.vlgmr.msra.gmra.mxu0 %vm1137_vm2, %v2028_v15  ;;  %v5922_v10 = vpop.eup %5921  ;;  %v5164_v15 = vld [vmem:[%s7187_s1 + $0x98] sm:$0xff] }
 0x697   : > { %5589 = vmatpush3.msra.mxu0 %v2212_v20  ;;  %v2030_v30 = vmul.f32 %v5922_v10, %v6557_v35 }
 0x698   : > { %5590 = vmatprep.subr.mxu0 %v2210_v47  ;;  %v6608_v16 = vpop.permute.xlu1 %2654  ;;  %v2299_v18 = vpop.permute.xlu0 %2298 }
 0x699   : > { %5591 = vmatpush3.msra.mxu0 %v2210_v47  ;;  %5595 = vmatprep.subr.mxu1 %v2299_v18 }
 0x69a   : > { %5602 = vmatprep.subr.mxu0 %v753_v4  ;;  %v5924_v25 = vpop.eup %5923 }
 0x69b   : > { %v2029_v27 = vmul.f32 %v5924_v25, %v6563_v40  ;;  %v5926_v31 = vpop.eup %5925 }
 0x69c   : > { %v6610_v26 = vpop.permute.xlu0 %2656  ;;  %v6613_v23 = vpop.permute.xlu1 %2650  ;;  %v2032_v40 = vmul.f32 %v5926_v31, %v6561_v37  ;;  %v5167_v31 = vld [vmem:[%s7187_s1 + $0xb0] sm:$0xff] }
 0x69d   : > { %5585 = vmatprep.mubr.msk.f32.mxu1 %vm1137_vm2, %v2029_v27  ;;  %v5168_v27 = vld [vmem:[%s7187_s1 + $0xb8] sm:$0xff] }
 0x69e   : > { %v5928_v33 = vpop.eup %5927  ;;  %5586 = vmatmul.mubr.msk.f32.vlgmr.msra.gmra.mxu1 %vm1137_vm2, %v2030_v30 }
 0x69f   : > { %5596 = vmatpush3.msra.mxu1 %v2299_v18  ;;  %v2031_v32 = vmul.f32 %v5928_v33, %v6571_v44  ;;  %v5930_v20 = vpop.eup %5929 }
 0x6a0   : > { %v2748_v34 = vpop.permute.xlu0 %2747  ;;  %5597 = vmatprep.subr.mxu1 %v2297_v13  ;;  %v2746_v35 = vpop.permute.xlu1 %2745  ;;  %v2034_v28 = vmul.f32 %v5930_v20, %v6569_v42 }
 0x6a1   : > { %5598 = vmatpush3.msra.mxu1 %v2297_v13  ;;  %5592 = vmatprep.mubr.msk.f32.mxu0 %vm1137_vm2, %v2031_v32 }
 0x6a2   : > { %v5932_v41 = vpop.eup %5931  ;;  %5593 = vmatmul.mubr.msk.f32.vlgmr.msra.gmra.mxu0 %vm1137_vm2, %v2032_v40  ;;  %5616 = vmatprep.subr.mxu1 %v752_v36 }
 0x6a3   : > { %v2033_v43 = vmul.f32 %v5932_v41, %v6577_v45  ;;  %5603 = vmatpush3.msra.mxu0 %v753_v4 }
 0x6a4   : > { %v2653_v44 = vpop.permute.xlu0 %2652  ;;  %5630 = vmatprep.subr.msk.mxu0 %vm778_vm1, %v6610_v26  ;;  %v2742_v21 = vpop.permute.xlu1 %2741 }
 0x6a5   : > { %5599 = vmatprep.mubr.msk.f32.mxu1 %vm1137_vm2, %v2033_v43 }
 0x6a6   : > { %5600 = vmatmul.mubr.msk.f32.vlgmr.msra.gmra.mxu1 %vm1137_vm2, %v2034_v28 }
 0x6a7   : > { %5617 = vmatpush3.msra.mxu1 %v752_v36  ;;  %5618 = vmatprep.mubr.msk.f32.mxu1 %vm778_vm1, %v6491_v38 }
 0x6a8   : > { %5637 = vmatprep.subr.msk.mxu1 %vm778_vm1, %v2748_v34  ;;  %v2839_v37 = vpop.permute.xlu0 %2838  ;;  %v2837_v45 = vpop.permute.xlu1 %2836 }
 0x6aa   : > { %5619 = vmatmul.mubr.msk.f32.vlgmr.msra.gmra.mxu1 %vm778_vm1, %v6489_v51 }
 0x6ab   : > { %5638 = vmatpush3.xpose.msk.msra.mxu1 %vm778_vm1, %v2748_v34  ;;  %5621 = vmatprep.mubr.msk.f32.mxu1 %vm778_vm1, %v6495_v53 }
 0x6ac   : > { %5639 = vmatprep.subr.msk.mxu1 %vm778_vm1, %v2746_v35  ;;  %v2744_v42 = vpop.permute.xlu0 %2743  ;;  %v2833_v53 = vpop.permute.xlu1 %2832 }
 0x6ae   : > { %5622 = vmatmul.mubr.msk.f32.gmra.mxu1 %vm778_vm1, %v6493_v52 }
 0x6af   : > { %5640 = vmatpush3.xpose.msk.msra.mxu1 %vm778_vm1, %v2746_v35  ;;  %5624 = vmatprep.mubr.msk.f32.mxu1 %vm778_vm1, %v6499_v55 }
 0x6b0   : > { %v2930_v38 = vpop.permute.xlu0 %2929  ;;  %v2928_v55 = vpop.permute.xlu1 %2927 }
 0x6b1   : > { %5651 = vmatprep.subr.msk.mxu1 %vm778_vm1, %v2930_v38 }
 0x6b2   : > { %5625 = vmatmul.mubr.msk.f32.gmra.mxu1 %vm778_vm1, %v6497_v54 }
 0x6b3   : > { %5627 = vmatprep.mubr.msk.f32.mxu1 %vm778_vm1, %v6509_v61 }
 0x6b4   : > { %v2835_v51 = vpop.permute.xlu0 %2834  ;;  %v2926_v54 = vpop.permute.xlu1 %2925 }
 0x6b6   : > { %5628 = vmatmul.mubr.msk.f32.gmra.mxu1 %vm778_vm1, %v6501_v39 }
 0x6b7   : > { %5641 = vmatprep.mubr.msk.f32.mxu1 %vm778_vm1, %v2742_v21 }
 0x6b8   : > { %v2924_v52 = vpop.permute.xlu0 %2923 }
 0x6ba   : > { %5642 = vmatmul.mubr.msk.f32.vlgmr.msra.gmra.mxu1 %vm778_vm1, %v2744_v42 }
 0x6bb   : > { %5652 = vmatpush3.xpose.msk.msra.mxu1 %vm778_vm1, %v2930_v38  ;;  %5655 = vmatprep.mubr.msk.f32.mxu1 %vm778_vm1, %v2924_v52 }
 0x6bc   : > { %5653 = vmatprep.subr.msk.mxu1 %vm778_vm1, %v2928_v55 }
 0x6bf   : > { %5654 = vmatpush3.xpose.msk.msra.mxu1 %vm778_vm1, %v2928_v55 }
 0x6c2   : > { %5656 = vmatmul.mubr.msk.f32.vlgmr.msra.gmra.mxu1 %vm778_vm1, %v2926_v54 }
 0x756   : > { %v5580_v61 = vpop.f32.mrf.mxu0 }
 0x758   : > { %v2113_v46 = vpop.f32.mrf.mxu0 }
 0x759   : > { %5604 = vmatprep.mubr.msk.f32.mxu0 %vm778_vm1, %v2113_v46 }
 0x75a   : > { %5605 = vmatmul.mubr.msk.f32.vlgmr.msra.gmra.mxu0 %vm778_vm1, %v5580_v61 }
 0x75b   : > { %5631 = vmatpush3.xpose.msk.msra.mxu0 %vm778_vm1, %v6610_v26 }
 0x75c   : > { %5632 = vmatprep.subr.msk.mxu0 %vm778_vm1, %v6608_v16 }
 0x75e   : > { %v5587_v39 = vpop.f32.mrf.mxu1 }
 0x75f   : > { %5633 = vmatpush3.xpose.msk.msra.mxu0 %vm778_vm1, %v6608_v16  ;;  %v5163_v16 = vld [vmem:[%s7187_s1 + $0x90] sm:$0xff] }
 0x760   : > { %5644 = vmatprep.subr.msk.mxu0 %vm778_vm1, %v2839_v37  ;;  %v2200_v47 = vpop.f32.mrf.mxu1 }
 0x761   : > { %5607 = vmatprep.mubr.msk.f32.mxu0 %vm778_vm1, %v2200_v47 }
 0x762   : > { %v5594_v50 = vpop.f32.mrf.mxu0  ;;  %5608 = vmatmul.mubr.msk.f32.gmra.mxu0 %vm778_vm1, %v5587_v39 }
 0x764   : > { %v2287_v29 = vpop.f32.mrf.mxu0 }
 0x765   : > { %5610 = vmatprep.mubr.msk.f32.mxu0 %vm778_vm1, %v2287_v29 }
 0x766   : > { %v5601_v48 = vpop.f32.mrf.mxu1  ;;  %5611 = vmatmul.mubr.msk.f32.gmra.mxu0 %vm778_vm1, %v5594_v50 }
 0x768   : > { %v2374_v56 = vpop.f32.mrf.mxu1 }
 0x769   : > { %5613 = vmatprep.mubr.msk.f32.mxu0 %vm778_vm1, %v2374_v56 }
 0x76a   : > { %v6673_v58 = vpop.f32.mrf.mxu1  ;;  %5614 = vmatmul.mubr.msk.f32.gmra.mxu0 %vm778_vm1, %v5601_v48 }
 0x76b   : > { %5634 = vmatprep.mubr.msk.f32.mxu0 %vm778_vm1, %v6613_v23 }
 0x76c   : > { %v6678_v0 = vpop.f32.mrf.mxu1 }
 0x76e   : > { %v6680_v3 = vpop.f32.mrf.mxu1  ;;  %5635 = vmatmul.mubr.msk.f32.vlgmr.msra.gmra.mxu0 %vm778_vm1, %v2653_v44 }
 0x76f   : > { %5645 = vmatpush3.xpose.msk.msra.mxu0 %vm778_vm1, %v2839_v37  ;;  %5648 = vmatprep.mubr.msk.f32.mxu0 %vm778_vm1, %v2833_v53 }
 0x770   : > { %v6685_v7 = vpop.f32.mrf.mxu1  ;;  %5646 = vmatprep.subr.msk.mxu0 %vm778_vm1, %v2837_v45 }
 0x772   : > { %v6688_v9 = vpop.f32.mrf.mxu1 }
 0x773   : > { %5647 = vmatpush3.xpose.msk.msra.mxu0 %vm778_vm1, %v2837_v45 }
 0x774   : > { %v6691_v11 = vpop.f32.mrf.mxu1 }
 0x776   : > { %v6693_v13 = vpop.f32.mrf.mxu1  ;;  %5649 = vmatmul.mubr.msk.f32.vlgmr.msra.gmra.mxu0 %vm778_vm1, %v2835_v51 }
 0x778   : > { %v6696_v49 = vpop.f32.mrf.mxu1 }
 0x77a   : > { %v5643_v4 = vpop.f32.mrf.mxu1 }
 0x77b   : > { %v2829_v18 = vadd.f32 %v5643_v4, %v5164_v15 }
 0x77c   : > { %v2823_v10 = vpop.f32.mrf.mxu1 }
 0x77d   : > { %v2824_v25 = vadd.f32 %v5163_v16, %v2823_v10  ;;  %v3023_v26 = vsel %vm1137_vm2, %v2829_v18, -inf  ;;  %v5162_v10 = vld [vmem:[%s7187_s1 + $0x88] sm:$0xff] }
 0x77e   : > { %3024 = vmax.xlane.f32.xlu0 %v3023_v26  ;;  %v5161_v26 = vld [vmem:[%s7187_s1 + $0x80] sm:$0xff] }
 0x77f   : > { %v3020_v23 = vsel %vm1137_vm2, %v2824_v25, -inf }
 0x782   : > { %v5657_v30 = vpop.f32.mrf.mxu1  ;;  %3021 = vmax.xlane.f32.xlu0 %v3020_v23 }
 0x783   : > { %v3011_v33 = vadd.f32 %v5657_v30, %v5168_v27 }
 0x784   : > { %v3005_v34 = vpop.f32.mrf.mxu1 }
 0x785   : > { %v3006_v32 = vadd.f32 %v5167_v31, %v3005_v34  ;;  %v3035_v36 = vsel %vm1137_vm2, %v3011_v33, -inf  ;;  %v5166_v34 = vld [vmem:[%s7187_s1 + $0xa8] sm:$0xff] }
 0x786   : > { %3036 = vmax.xlane.f32.xlu1 %v3035_v36  ;;  %v5165_v36 = vld [vmem:[%s7187_s1 + $0xa0] sm:$0xff] }
 0x787   : > { %v3032_v20 = vsel %vm1137_vm2, %v3006_v32, -inf }
 0x788   : > { %3033 = vmax.xlane.f32.xlu0 %v3032_v20 }
 0x807   : > { %v3025_v40 = vpop.xlane.xlu0 %3024 }
 0x808   : > { %v3041_v41 = vsub.f32 %v2829_v18, %v3025_v40 }
 0x80a   : > { %v3052_v35 = vmul.f32 1.442695, %v3041_v41 }
 0x80b   : > { %v3022_v43 = vpop.xlane.xlu0 %3021 }
 0x80c   : > { %5933 = vpow2.f32 %v3052_v35  ;;  %v3040_v44 = vsub.f32 %v2824_v25, %v3022_v43 }
 0x80e   : > { %v3050_v28 = vmul.f32 1.442695, %v3040_v44 }
 0x80f   : > { %v3037_v37 = vpop.xlane.xlu1 %3036 }
 0x810   : > { %5935 = vpow2.f32 %v3050_v28  ;;  %v3045_v21 = vsub.f32 %v3011_v33, %v3037_v37 }
 0x811   : > { %v3034_v42 = vpop.xlane.xlu0 %3033 }
 0x812   : > { %v3060_v45 = vmul.f32 1.442695, %v3045_v21  ;;  %v3044_v38 = vsub.f32 %v3006_v32, %v3034_v42 }
 0x814   : > { %5937 = vpow2.f32 %v3060_v45  ;;  %v3058_v51 = vmul.f32 1.442695, %v3044_v38 }
 0x816   : > { %5939 = vpow2.f32 %v3058_v51 }
 0x819   : > { %v6714_v53 = vpop.eup %5933 }
 0x81a   : > { %v3071_v52 = vsel %vm1137_vm2, %v6714_v53, 0.0  ;;  %v6718_v54 = vpop.f32.mrf.mxu0 }
 0x81b   : > { %3072 = vadd.xlane.f32.xlu1 %v3071_v52 }
 0x81c   : > { %v6723_v39 = vpop.f32.mrf.mxu0 }
 0x81d   : > { %v5936_v55 = vpop.eup %5935 }
 0x81e   : > { %v3068_v61 = vsel %vm1137_vm2, %v5936_v55, 0.0 }
 0x81f   : > { %3069 = vadd.xlane.f32.xlu0 %v3068_v61 }
 0x821   : > { %v6721_v46 = vpop.eup %5937 }
 0x822   : > { %v3083_v47 = vsel %vm1137_vm2, %v6721_v46, 0.0  ;;  %v6729_v29 = vpop.f32.mrf.mxu0 }
 0x823   : > { %v6727_v50 = vpop.eup %5939  ;;  %3084 = vadd.xlane.f32.xlu1 %v3083_v47 }
 0x824   : > { %v3080_v48 = vsel %vm1137_vm2, %v6727_v50, 0.0  ;;  %v6733_v56 = vpop.f32.mrf.mxu0 }
 0x825   : > { %3081 = vadd.xlane.f32.xlu0 %v3080_v48 }
 0x826   : > { %v6735_v15 = vpop.f32.mrf.mxu0 }
 0x828   : > { %v6737_v4 = vpop.f32.mrf.mxu0 }
 0x82a   : > { %v6739_v16 = vpop.f32.mrf.mxu0 }
 0x82c   : > { %v6741_v18 = vpop.f32.mrf.mxu0 }
 0x82e   : > { %v5636_v25 = vpop.f32.mrf.mxu0 }
 0x82f   : > { %v2738_v27 = vadd.f32 %v5636_v25, %v5162_v10 }
 0x830   : > { %v2732_v23 = vpop.f32.mrf.mxu0 }
 0x831   : > { %v2733_v30 = vadd.f32 %v5161_v26, %v2732_v23  ;;  %v3017_v31 = vsel %vm1137_vm2, %v2738_v27, -inf }
 0x832   : > { %3018 = vmax.xlane.f32.xlu1 %v3017_v31 }
 0x833   : > { %v3014_v33 = vsel %vm1137_vm2, %v2733_v30, -inf }
 0x834   : > { %3015 = vmax.xlane.f32.xlu0 %v3014_v33 }
 0x836   : > { %v5650_v32 = vpop.f32.mrf.mxu0 }
 0x837   : > { %v2920_v20 = vadd.f32 %v5650_v32, %v5166_v34 }
 0x838   : > { %v2914_v40 = vpop.f32.mrf.mxu0 }
 0x839   : > { %v2915_v41 = vadd.f32 %v5165_v36, %v2914_v40  ;;  %v3029_v35 = vsel %vm1137_vm2, %v2920_v20, -inf }
 0x83a   : > { %3030 = vmax.xlane.f32.xlu1 %v3029_v35 }
 0x83b   : > { %v3026_v43 = vsel %vm1137_vm2, %v2915_v41, -inf }
 0x83c   : > { %3027 = vmax.xlane.f32.xlu0 %v3026_v43 }
 0x84b   : > { %3102 = vrot.lane.b32.xlu1 %v6244_v59, %s6052_s20 }
 0x84f   : > { %3191 = vrot.lane.b32.xlu1 %v6251_v62, %s6052_s20 }
 0x852   : > { %3104 = vrot.lane.b32.xlu0 %v6242_v57, %s6052_s20 }
 0x853   : > { %3189 = vrot.lane.b32.xlu1 %v6253_v63, %s6052_s20 }
 0x8a4   : > { %v3073_v28 = vpop.xlane.xlu1 %3072 }
 0x8a8   : > { %v3070_v44 = vpop.xlane.xlu0 %3069 }
 0x8a9   : > { %5941 = vrcp.f32 %v3070_v44 }
 0x8aa   : > { %5943 = vrcp.f32 %v3073_v28 }
 0x8ac   : > { %v6767_v42 = vpop.xlane.xlu1 %3084 }
 0x8ae   : > { %v3082_v45 = vpop.xlane.xlu0 %3081 }
 0x8b6   : > { %v5942_v37 = vpop.eup %5941 }
 0x8b7   : > { %v3096_v21 = vmul.f32 %v5942_v37, %v5936_v55  ;;  %v5944_v31 = vpop.eup %5943 }
 0x8b8   : > { %v3097_v36 = vmul.f32 %v5944_v31, %v6714_v53 }
 0x8b9   : > { %5669 = vmatprep.mubr.msk.f32.mxu1 %vm1137_vm2, %v3096_v21 }
 0x8bb   : > { %v3019_v38 = vpop.xlane.xlu1 %3018 }
 0x8bc   : > { %v3039_v51 = vsub.f32 %v2738_v27, %v3019_v38 }
 0x8bd   : > { %v3016_v52 = vpop.xlane.xlu0 %3015 }
 0x8be   : > { %v3048_v61 = vmul.f32 1.442695, %v3039_v51  ;;  %v3038_v47 = vsub.f32 %v2733_v30, %v3016_v52 }
 0x8c0   : > { %5945 = vpow2.f32 %v3048_v61  ;;  %v3046_v48 = vmul.f32 1.442695, %v3038_v47 }
 0x8c1   : > { %5947 = vrcp.f32 %v3082_v45 }
 0x8c2   : > { %5949 = vpow2.f32 %v3046_v48 }
 0x8c3   : > { %v3031_v10 = vpop.xlane.xlu1 %3030 }
 0x8c4   : > { %v3043_v43 = vsub.f32 %v2920_v20, %v3031_v10 }
 0x8c5   : > { %v3028_v25 = vpop.xlane.xlu0 %3027 }
 0x8c6   : > { %v3042_v44 = vsub.f32 %v2915_v41, %v3028_v25  ;;  %v3056_v28 = vmul.f32 1.442695, %v3043_v43 }
 0x8c7   : > { %v3103_v26 = vpop.permute.xlu1 %3102 }
 0x8c8   : > { %v3054_v53 = vmul.f32 1.442695, %v3042_v44  ;;  %5951 = vpow2.f32 %v3056_v28 }
 0x8c9   : > { %v3105_v23 = vpop.permute.xlu0 %3104 }
 0x8ca   : > { %5658 = vmatprep.subr.mxu0 %v3105_v23  ;;  %5953 = vpow2.f32 %v3054_v53 }
 0x8cb   : > { %v3192_v55 = vpop.permute.xlu1 %3191  ;;  %5659 = vmatpush3.msra.mxu0 %v3105_v23 }
 0x8cc   : > { %5660 = vmatprep.subr.mxu0 %v3103_v26  ;;  %5665 = vmatprep.subr.mxu1 %v3192_v55 }
 0x8cd   : > { %v5946_v33 = vpop.eup %5945  ;;  %5661 = vmatpush3.msra.mxu0 %v3103_v26  ;;  %5666 = vmatpush3.msra.mxu1 %v3192_v55 }
 0x8ce   : > { %v5948_v27 = vpop.eup %5947  ;;  %v3065_v30 = vsel %vm1137_vm2, %v5946_v33, 0.0 }
 0x8cf   : > { %v5950_v34 = vpop.eup %5949  ;;  %v3190_v32 = vpop.permute.xlu1 %3189  ;;  %3066 = vadd.xlane.f32.xlu1 %v3065_v30  ;;  %v3100_v35 = vmul.f32 %v5948_v27, %v6727_v50 }
 0x8d0   : > { %5667 = vmatprep.subr.mxu1 %v3190_v32  ;;  %v3062_v40 = vsel %vm1137_vm2, %v5950_v34, 0.0 }
 0x8d1   : > { %5668 = vmatpush3.msra.mxu1 %v3190_v32  ;;  %3063 = vadd.xlane.f32.xlu0 %v3062_v40 }
 0x8d2   : > { %5670 = vmatmul.mubr.msk.f32.vlgmr.msra.gmra.mxu1 %vm1137_vm2, %v3097_v36 }
 0x8d3   : > { %5683 = vmatprep.mubr.msk.f32.mxu1 %vm1137_vm2, %v3100_v35 }
 0x8d5   : > { %v6780_v37 = vpop.eup %5951 }
 0x8d6   : > { %v3077_v50 = vsel %vm1137_vm2, %v6780_v37, 0.0 }
 0x8d7   : > { %v6782_v21 = vpop.eup %5953 }
 0x8d8   : > { %v3074_v45 = vsel %vm1137_vm2, %v6782_v21, 0.0 }
 0x8e0   : > { %3276 = vrot.lane.b32.xlu1 %v6269_v6, %s6052_s20 }
 0x8e7   : > { %3278 = vrot.lane.b32.xlu0 %v6257_v1, %s6052_s20 }
 0x904   : > { %3078 = vadd.xlane.f32.xlu1 %v3077_v50 }
 0x906   : > { %3075 = vadd.xlane.f32.xlu0 %v3074_v45 }
 0x915   : > { %3363 = vrot.lane.b32.xlu1 %v6273_v8, %s6052_s20 }
 0x919   : > { %3600 = vrot.lane.b32.xlu1 %v6244_v59, %s6053_s21 }
 0x91c   : > { %3365 = vrot.lane.b32.xlu0 %v6266_v5, %s6052_s20  ;;  %s467_s20 = scalar_lea.vmem %s7200_s14, %s5256_s15 }
 0x91d   : > { %3693 = vrot.lane.b32.xlu1 %v6251_v62, %s6053_s21 }
 0x920   : > { %3602 = vrot.lane.b32.xlu0 %v6242_v57, %s6053_s21 }
 0x921   : > { %3691 = vrot.lane.b32.xlu1 %v6253_v63, %s6053_s21 }
 0x924   : > { %3596 = vrot.lane.b32.xlu0 %v6249_v60, %s6054_s22 }
 0x925   : > { %3687 = vrot.lane.b32.xlu1 %v6261_v2, %s6054_s22 }
 0x928   : > { %3598 = vrot.lane.b32.xlu0 %v6282_v12, %s6054_s22 }
 0x929   : > { %3782 = vrot.lane.b32.xlu1 %v6269_v6, %s6053_s21 }
 0x92c   : > { %3784 = vrot.lane.b32.xlu0 %v6257_v1, %s6053_s21 }
 0x92d   : > { %3778 = vrot.lane.b32.xlu1 %v6286_v14, %s6054_s22 }
 0x930   : > { %3689 = vrot.lane.b32.xlu0 %v6298_v17, %s6054_s22 }
 0x931   : > { %3873 = vrot.lane.b32.xlu1 %v6273_v8, %s6053_s21 }
 0x934   : > { %3875 = vrot.lane.b32.xlu0 %v6266_v5, %s6053_s21 }
 0x935   : > { %3871 = vrot.lane.b32.xlu1 %v6318_v24, %s6054_s22 }
 0x938   : > { %3780 = vrot.lane.b32.xlu0 %v6311_v22, %s6054_s22 }
 0x93c   : > { %3869 = vrot.lane.b32.xlu0 %v6304_v19, %s6054_s22  ;;  %v754_v19 = vld [vmem:[%s7192_s6 + $0x10] sm:$0xff] }
 0x958   : > { %v3067_v60 = vpop.xlane.xlu1 %3066 }
 0x959   : > { %5955 = vrcp.f32 %v3067_v60 }
 0x95a   : > { %v3064_v2 = vpop.xlane.xlu0 %3063 }
 0x95b   : > { %5957 = vrcp.f32 %v3064_v2  ;;  %v5202_v2 = vld [vmem:[%s7187_s1 + $0xc8] sm:$0xff] }
 0x95c   : > { %v3277_v38 = vpop.permute.xlu1 %3276  ;;  %5959 = vrcp.f32 %v6767_v42 }
 0x95e   : > { %v3279_v12 = vpop.permute.xlu0 %3278 }
 0x95f   : > { %5672 = vmatprep.subr.mxu0 %v3279_v12 }
 0x966   : > { %v5956_v20 = vpop.eup %5955 }
 0x967   : > { %v3095_v17 = vmul.f32 %v5956_v20, %v5946_v33  ;;  %v5201_v20 = vld [vmem:[%s7187_s1 + $0xc0] sm:$0xff] }
 0x968   : > { %v5958_v14 = vpop.eup %5957 }
 0x969   : > { %v3094_v41 = vmul.f32 %v5958_v14, %v5950_v34  ;;  %v5960_v52 = vpop.eup %5959 }
 0x96a   : > { %v3101_v48 = vmul.f32 %v5960_v52, %v6721_v46 }
 0x96b   : > { %5662 = vmatprep.mubr.msk.f32.mxu0 %vm1137_vm2, %v3094_v41 }
 0x96c   : > { %5663 = vmatmul.mubr.msk.f32.vlgmr.msra.gmra.mxu0 %vm1137_vm2, %v3095_v17 }
 0x96d   : > { %5673 = vmatpush3.msra.mxu0 %v3279_v12 }
 0x96e   : > { %5674 = vmatprep.subr.mxu0 %v3277_v38 }
 0x96f   : > { %5675 = vmatpush3.msra.mxu0 %v3277_v38 }
 0x970   : > { %5686 = vmatprep.subr.mxu0 %v754_v19 }
 0x98d   : > { %v3079_v22 = vpop.xlane.xlu1 %3078 }
 0x98e   : > { %5961 = vrcp.f32 %v3079_v22 }
 0x98f   : > { %v3076_v24 = vpop.xlane.xlu0 %3075 }
 0x990   : > { %5963 = vrcp.f32 %v3076_v24 }
 0x991   : > { %v3364_v51 = vpop.permute.xlu1 %3363 }
 0x992   : > { %v5671_v53 = vpop.f32.mrf.mxu1 }
 0x993   : > { %v3366_v61 = vpop.permute.xlu0 %3365 }
 0x994   : > { %5679 = vmatprep.subr.mxu1 %v3366_v61  ;;  %v3267_v50 = vpop.f32.mrf.mxu1 }
 0x995   : > { %v3601_v47 = vpop.permute.xlu1 %3600  ;;  %5680 = vmatpush3.msra.mxu1 %v3366_v61  ;;  %v5203_v61 = vld [vmem:[%s7187_s1 + $0xd0] sm:$0xff] }
 0x996   : > { %5681 = vmatprep.subr.mxu1 %v3364_v51 }
 0x997   : > { %5682 = vmatpush3.msra.mxu1 %v3364_v51  ;;  %v3603_v10 = vpop.permute.xlu0 %3602  ;;  %v5204_v51 = vld [vmem:[%s7187_s1 + $0xd8] sm:$0xff] }
 0x998   : > { %5684 = vmatmul.mubr.msk.f32.vlgmr.msra.gmra.mxu1 %vm1137_vm2, %v3101_v48  ;;  %5700 = vmatprep.subr.msk.mxu1 %vm778_vm1, %v3603_v10 }
 0x999   : > { %v3694_v42 = vpop.permute.xlu1 %3693  ;;  %5701 = vmatpush3.xpose.msk.msra.mxu1 %vm778_vm1, %v3603_v10 }
 0x99a   : > { %5702 = vmatprep.subr.msk.mxu1 %vm778_vm1, %v3601_v47 }
 0x99b   : > { %v3597_v25 = vpop.permute.xlu0 %3596  ;;  %v5962_v26 = vpop.eup %5961 }
 0x99c   : > { %5704 = vmatprep.mubr.msk.f32.mxu1 %vm778_vm1, %v3597_v25  ;;  %v3099_v33 = vmul.f32 %v5962_v26, %v6780_v37  ;;  %v2608_v26 = vadd.f32 %v6673_v58, %v6718_v54 }
 0x99d   : > { %v5964_v23 = vpop.eup %5963  ;;  %v3692_v55 = vpop.permute.xlu1 %3691  ;;  %5703 = vmatpush3.xpose.msk.msra.mxu1 %vm778_vm1, %v3601_v47 }
 0x99e   : > { %5707 = vmatprep.subr.msk.mxu1 %vm778_vm1, %v3694_v42  ;;  %v3098_v46 = vmul.f32 %v5964_v23, %v6782_v21 }
 0x99f   : > { %v3599_v31 = vpop.permute.xlu0 %3598 }
 0x9a0   : > { %5676 = vmatprep.mubr.msk.f32.mxu0 %vm1137_vm2, %v3098_v46  ;;  %5705 = vmatmul.mubr.msk.f32.vlgmr.msra.gmra.mxu1 %vm778_vm1, %v3599_v31 }
 0x9a1   : > { %v3688_v27 = vpop.permute.xlu1 %3687  ;;  %5677 = vmatmul.mubr.msk.f32.vlgmr.msra.gmra.mxu0 %vm1137_vm2, %v3099_v33  ;;  %5708 = vmatpush3.xpose.msk.msra.mxu1 %vm778_vm1, %v3694_v42  ;;  %v2618_v33 = vadd.f32 %v6680_v3, %v6729_v29  ;;  %v2628_v3 = vadd.f32 %v6688_v9, %v6735_v15  ;;  %v2633_v9 = vadd.f32 %v6696_v49, %v6741_v18  ;;  %v5205_v49 = vld [vmem:[%s7187_s1 + $0xe0] sm:$0xff] }
 0x9a2   : > { %5709 = vmatprep.subr.msk.mxu1 %vm778_vm1, %v3692_v55  ;;  %5711 = vmatprep.mubr.msk.f32.mxu1 %vm778_vm1, %v3688_v27 }
 0x9a3   : > { %5687 = vmatpush3.msra.mxu0 %v754_v19  ;;  %v3785_v30 = vpop.permute.xlu0 %3784 }
 0x9a4   : > { %5714 = vmatprep.subr.msk.mxu0 %vm778_vm1, %v3785_v30 }
 0x9a5   : > { %v3783_v34 = vpop.permute.xlu1 %3782  ;;  %5710 = vmatpush3.xpose.msk.msra.mxu1 %vm778_vm1, %v3692_v55  ;;  %v2603_v55 = vadd.f32 %v6678_v0, %v6723_v39 }
 0x9a7   : > { %v3690_v32 = vpop.permute.xlu0 %3689 }
 0x9a8   : > { %5712 = vmatmul.mubr.msk.f32.vlgmr.msra.gmra.mxu1 %vm778_vm1, %v3690_v32 }
 0x9a9   : > { %v3779_v36 = vpop.permute.xlu1 %3778 }
 0x9ab   : > { %v3876_v40 = vpop.permute.xlu0 %3875 }
 0x9ac   : > { %5721 = vmatprep.subr.msk.mxu1 %vm778_vm1, %v3876_v40 }
 0x9ad   : > { %v3874_v35 = vpop.permute.xlu1 %3873  ;;  %5722 = vmatpush3.xpose.msk.msra.mxu1 %vm778_vm1, %v3876_v40 }
 0x9ae   : > { %5723 = vmatprep.subr.msk.mxu1 %vm778_vm1, %v3874_v35 }
 0x9af   : > { %v3781_v43 = vpop.permute.xlu0 %3780 }
 0x9b1   : > { %5724 = vmatpush3.xpose.msk.msra.mxu1 %vm778_vm1, %v3874_v35  ;;  %v3872_v28 = vpop.permute.xlu1 %3871 }
 0x9b3   : > { %v3870_v44 = vpop.permute.xlu0 %3869 }
 0x9b4   : > { %5725 = vmatprep.mubr.msk.f32.mxu1 %vm778_vm1, %v3870_v44 }
 0x9b5   : > { %5726 = vmatmul.mubr.msk.f32.vlgmr.msra.gmra.mxu1 %vm778_vm1, %v3872_v28 }
 0xa2c   : > { %v5664_v37 = vpop.f32.mrf.mxu0 }
 0xa2e   : > { %v3180_v21 = vpop.f32.mrf.mxu0 }
 0xa2f   : > { %5688 = vmatprep.mubr.msk.f32.mxu0 %vm778_vm1, %v3180_v21 }
 0xa30   : > { %5689 = vmatmul.mubr.msk.f32.vlgmr.msra.gmra.mxu0 %vm778_vm1, %v5664_v37 }
 0xa31   : > { %5715 = vmatpush3.xpose.msk.msra.mxu0 %vm778_vm1, %v3785_v30  ;;  %5691 = vmatprep.mubr.msk.f32.mxu0 %vm778_vm1, %v3267_v50  ;;  %v2638_v50 = vadd.f32 %v6693_v13, %v6739_v16  ;;  %v5208_v16 = vld [vmem:[%s7187_s1 + $0xf8] sm:$0xff] }
 0xa32   : > { %5716 = vmatprep.subr.msk.mxu0 %vm778_vm1, %v3783_v34 }
 0xa34   : > { %5692 = vmatmul.mubr.msk.f32.gmra.mxu0 %vm778_vm1, %v5671_v53 }
 0xa35   : > { %5717 = vmatpush3.xpose.msk.msra.mxu0 %vm778_vm1, %v3783_v34  ;;  %v2613_v34 = vadd.f32 %v6685_v7, %v6733_v56  ;;  %v2623_v7 = vadd.f32 %v6691_v11, %v6737_v4 }
 0xa58   : > { %v5685_v45 = vpop.f32.mrf.mxu1 }
 0xa5a   : > { %v3441_v60 = vpop.f32.mrf.mxu1 }
 0xa60   : > { %v5706_v12 = vpop.f32.mrf.mxu1 }
 0xa61   : > { %v3684_v14 = vadd.f32 %v5706_v12, %v5202_v2  ;;  %v5678_v41 = vpop.f32.mrf.mxu0 }
 0xa62   : > { %v3678_v17 = vpop.f32.mrf.mxu1 }
 0xa63   : > { %v3679_v38 = vadd.f32 %v5201_v20, %v3678_v17  ;;  %v3354_v19 = vpop.f32.mrf.mxu0  ;;  %v3963_v22 = vsel %vm1137_vm2, %v3684_v14, -inf  ;;  %v5206_v20 = vld [vmem:[%s7187_s1 + $0xe8] sm:$0xff]  ;;  %v5207_v17 = vld [vmem:[%s7187_s1 + $0xf0] sm:$0xff] }
 0xa64   : > { %5694 = vmatprep.mubr.msk.f32.mxu0 %vm778_vm1, %v3354_v19  ;;  %3964 = vmax.xlane.f32.xlu1 %v3963_v22 }
 0xa65   : > { %5695 = vmatmul.mubr.msk.f32.gmra.mxu0 %vm778_vm1, %v5678_v41  ;;  %v3960_v24 = vsel %vm1137_vm2, %v3679_v38, -inf }
 0xa66   : > { %5697 = vmatprep.mubr.msk.f32.mxu0 %vm778_vm1, %v3441_v60  ;;  %3961 = vmax.xlane.f32.xlu0 %v3960_v24 }
 0xa68   : > { %v5713_v52 = vpop.f32.mrf.mxu1 }
 0xa69   : > { %v3775_v47 = vadd.f32 %v5713_v52, %v5204_v51  ;;  %5698 = vmatmul.mubr.msk.f32.gmra.mxu0 %vm778_vm1, %v5685_v45 }
 0xa6a   : > { %v3769_v48 = vpop.f32.mrf.mxu1  ;;  %5718 = vmatprep.mubr.msk.f32.mxu0 %vm778_vm1, %v3779_v36 }
 0xa6b   : > { %v3770_v10 = vadd.f32 %v5203_v61, %v3769_v48  ;;  %v3969_v42 = vsel %vm1137_vm2, %v3775_v47, -inf }
 0xa6c   : > { %3970 = vmax.xlane.f32.xlu0 %v3969_v42 }
 0xa6d   : > { %5719 = vmatmul.mubr.msk.f32.vlgmr.msra.gmra.mxu0 %vm778_vm1, %v3781_v43  ;;  %v3966_v25 = vsel %vm1137_vm2, %v3770_v10, -inf }
 0xa70   : > { %3967 = vmax.xlane.f32.xlu0 %v3966_v25 }
 0xa75   : > { %v5727_v11 = vpop.f32.mrf.mxu1 }
 0xa76   : > { %v3957_v19 = vadd.f32 %v5727_v11, %v5208_v16 }
 0xa77   : > { %v3951_v41 = vpop.f32.mrf.mxu1 }
 0xa78   : > { %v3952_v51 = vadd.f32 %v5207_v17, %v3951_v41  ;;  %v3981_v61 = vsel %vm1137_vm2, %v3957_v19, -inf }
 0xa7a   : > { %v3978_v48 = vsel %vm1137_vm2, %v3952_v51, -inf }
 0xaed   : > { %v3965_v40 = vpop.xlane.xlu1 %3964 }
 0xaee   : > { %v3985_v39 = vsub.f32 %v3684_v14, %v3965_v40 }
 0xaef   : > { %v3962_v54 = vpop.xlane.xlu0 %3961 }
 0xaf0   : > { %v5690_v23 = vpop.f32.mrf.mxu0  ;;  %v3984_v35 = vsub.f32 %v3679_v38, %v3962_v54  ;;  %v3994_v29 = vmul.f32 1.442695, %v3985_v39 }
 0xaf1   : > { %v6872_v46 = vadd.f32 %v5690_v23, %v2608_v26 }
 0xaf2   : > { %v3540_v31 = vpop.f32.mrf.mxu0  ;;  %v3992_v56 = vmul.f32 1.442695, %v3984_v35  ;;  %5965 = vpow2.f32 %v3994_v29 }
 0xaf3   : > { %v6876_v27 = vadd.f32 %v3540_v31, %v2603_v55 }
 0xaf4   : > { %v5693_v30 = vpop.f32.mrf.mxu0  ;;  %5967 = vpow2.f32 %v3992_v56 }
 0xaf5   : > { %v6880_v32 = vadd.f32 %v5693_v30, %v2618_v33  ;;  %v3971_v0 = vpop.xlane.xlu0 %3970 }
 0xaf6   : > { %v3550_v36 = vpop.f32.mrf.mxu0  ;;  %v3987_v44 = vsub.f32 %v3775_v47, %v3971_v0 }
 0xaf7   : > { %v6882_v58 = vadd.f32 %v3550_v36, %v2613_v34 }
 0xaf8   : > { %v3998_v45 = vmul.f32 1.442695, %v3987_v44 }
 0xaf9   : > { %v3968_v43 = vpop.xlane.xlu0 %3967 }
 0xafa   : > { %v3986_v53 = vsub.f32 %v3770_v10, %v3968_v43  ;;  %5969 = vpow2.f32 %v3998_v45 }
 0xafc   : > { %v3996_v15 = vmul.f32 1.442695, %v3986_v53 }
 0xafe   : > { %5971 = vpow2.f32 %v3996_v15 }
 0xaff   : > { %v6915_v47 = vpop.eup %5965 }
 0xb00   : > { %v4011_v42 = vsel %vm1137_vm2, %v6915_v47, 0.0 }
 0xb01   : > { %v5968_v10 = vpop.eup %5967 }
 0xb02   : > { %v4008_v26 = vsel %vm1137_vm2, %v5968_v10, 0.0 }
 0xb07   : > { %v6920_v25 = vpop.eup %5969 }
 0xb08   : > { %v4017_v55 = vsel %vm1137_vm2, %v6920_v25, 0.0 }
 0xb0b   : > { %v6923_v23 = vpop.eup %5971 }
 0xb0c   : > { %v4014_v31 = vsel %vm1137_vm2, %v6923_v23, 0.0 }
 0xb25   : > { %v5696_v28 = vpop.f32.mrf.mxu0 }
 0xb26   : > { %v6888_v37 = vadd.f32 %v5696_v28, %v2628_v3 }
 0xb27   : > { %v3560_v21 = vpop.f32.mrf.mxu0 }
 0xb28   : > { %v6892_v60 = vadd.f32 %v3560_v21, %v2623_v7 }
 0xb29   : > { %v5699_v2 = vpop.f32.mrf.mxu0 }
 0xb2a   : > { %v6896_v12 = vadd.f32 %v5699_v2, %v2638_v50 }
 0xb2b   : > { %v3570_v4 = vpop.f32.mrf.mxu0 }
 0xb2c   : > { %v6901_v13 = vadd.f32 %v3570_v4, %v2633_v9 }
 0xb2d   : > { %v5720_v14 = vpop.f32.mrf.mxu0 }
 0xb2e   : > { %v3866_v18 = vadd.f32 %v5720_v14, %v5206_v20 }
 0xb2f   : > { %v3860_v38 = vpop.f32.mrf.mxu0 }
 0xb30   : > { %v3861_v22 = vadd.f32 %v5205_v49, %v3860_v38  ;;  %v3975_v24 = vsel %vm1137_vm2, %v3866_v18, -inf }
 0xb31   : > { %3976 = vmax.xlane.f32.xlu1 %v3975_v24 }
 0xb32   : > { %v3972_v52 = vsel %vm1137_vm2, %v3861_v22, -inf }
 0xb33   : > { %3973 = vmax.xlane.f32.xlu0 %v3972_v52 }
 0xb35   : > { %3982 = vmax.xlane.f32.xlu1 %v3981_v61 }
 0xb37   : > { %3979 = vmax.xlane.f32.xlu0 %v3978_v48 }
 0xb39   : > { %4012 = vadd.xlane.f32.xlu1 %v4011_v42  ;;  %v755_v42 = vld [vmem:[%s7192_s6 + $0x18] sm:$0xff] }
 0xb3b   : > { %4009 = vadd.xlane.f32.xlu0 %v4008_v26 }
 0xb3d   : > { %4018 = vadd.xlane.f32.xlu1 %v4017_v55 }
 0xb3f   : > { %4015 = vadd.xlane.f32.xlu0 %v4014_v31 }
 0xbba   : > { %v3977_v33 = vpop.xlane.xlu1 %3976 }
 0xbbb   : > { %v3989_v21 = vsub.f32 %v3866_v18, %v3977_v33 }
 0xbbc   : > { %v3974_v30 = vpop.xlane.xlu0 %3973 }
 0xbbd   : > { %v3988_v56 = vsub.f32 %v3861_v22, %v3974_v30  ;;  %v4002_v50 = vmul.f32 1.442695, %v3989_v21 }
 0xbbe   : > { %v3983_v34 = vpop.xlane.xlu1 %3982 }
 0xbbf   : > { %v3991_v36 = vsub.f32 %v3957_v19, %v3983_v34  ;;  %v4000_v53 = vmul.f32 1.442695, %v3988_v56 }
 0xbc0   : > { %v3980_v54 = vpop.xlane.xlu0 %3979 }
 0xbc1   : > { %v4006_v40 = vmul.f32 1.442695, %v3991_v36  ;;  %v3990_v0 = vsub.f32 %v3952_v51, %v3980_v54 }
 0xbc3   : > { %5973 = vpow2.f32 %v4006_v40  ;;  %v4004_v39 = vmul.f32 1.442695, %v3990_v0 }
 0xbc4   : > { %v4010_v35 = vpop.xlane.xlu0 %4009 }
 0xbc5   : > { %5975 = vpow2.f32 %v4004_v39  ;;  %v5241_v39 = vld [vmem:[%s7193_s7] ss:$0 sm:$0xff] }
 0xbc6   : > { %5977 = vrcp.f32 %v4010_v35 }
 0xbc7   : > { %5979 = vpow2.f32 %v4000_v53 }
 0xbc8   : > { %5981 = vpow2.f32 %v4002_v50 }
 0xbd0   : > { %v6929_v43 = vpop.eup %5973 }
 0xbd1   : > { %v4029_v3 = vsel %vm1137_vm2, %v6929_v43, 0.0 }
 0xbd2   : > { %v6933_v29 = vpop.eup %5975  ;;  %4030 = vadd.xlane.f32.xlu1 %v4029_v3 }
 0xbd3   : > { %v5978_v44 = vpop.eup %5977  ;;  %v4026_v28 = vsel %vm1137_vm2, %v6933_v29, 0.0 }
 0xbd4   : > { %4027 = vadd.xlane.f32.xlu0 %v4026_v28  ;;  %v4040_v7 = vmul.f32 %v5978_v44, %v5968_v10  ;;  %v5980_v45 = vpop.eup %5979  ;;  %v6030_v28 = vld [vmem:[%s6147_s18] sm:$0xff] }
 0xbd5   : > { %v4020_v2 = vsel %vm1137_vm2, %v5980_v45, 0.0 }
 0xbd6   : > { %5732 = vmatprep.mubr.msk.f32.mxu0 %vm1137_vm2, %v4040_v7 }
 0xbe3   : > { %4048 = vrot.lane.b32.xlu1 %v6244_v59, %s6055_s16  ;;  %v6945_v59 = vpop.eup %5981 }
 0xbe7   : > { %4137 = vrot.lane.b32.xlu1 %v6251_v62, %s6055_s16  ;;  %v4013_v62 = vpop.xlane.xlu1 %4012 }
 0xbe8   : > { %5983 = vrcp.f32 %v4013_v62  ;;  %v6032_v62 = vld [vmem:[%s6147_s18 + $0x10] sm:$0xff] }
 0xbea   : > { %4050 = vrot.lane.b32.xlu0 %v6242_v57, %s6055_s16  ;;  %v4023_v57 = vsel %vm1137_vm2, %v6945_v59, 0.0 }
 0xbeb   : > { %4135 = vrot.lane.b32.xlu1 %v6253_v63, %s6055_s16  ;;  %v4016_v63 = vpop.xlane.xlu0 %4015 }
 0xbec   : > { %5985 = vrcp.f32 %v4016_v63 }
 0xbee   : > { %4224 = vrot.lane.b32.xlu0 %v6257_v1, %s6055_s16  ;;  %v4019_v1 = vpop.xlane.xlu1 %4018 }
 0xbef   : > { %4222 = vrot.lane.b32.xlu1 %v6269_v6, %s6055_s16  ;;  %5987 = vrcp.f32 %v4019_v1 }
 0xbf5   : > { %v5984_v11 = vpop.eup %5983 }
 0xbf9   : > { %v5986_v20 = vpop.eup %5985 }
 0xbfa   : > { %v4042_v49 = vmul.f32 %v5986_v20, %v6923_v23 }
 0xbfc   : > { %v5988_v14 = vpop.eup %5987 }
 0xbfd   : > { %v4043_v41 = vmul.f32 %v5988_v14, %v6920_v25 }
 0xc0d   : > { %4021 = vadd.xlane.f32.xlu0 %v4020_v2 }
 0xc13   : > { %4024 = vadd.xlane.f32.xlu1 %v4023_v57 }
 0xc23   : > { %4311 = vrot.lane.b32.xlu0 %v6266_v5, %s6055_s16  ;;  %v4041_v5 = vmul.f32 %v5984_v11, %v6915_v47  ;;  %v6033_v11 = vld [vmem:[%s6147_s18 + $0x28] sm:$0xff] }
 0xc24   : > { %4309 = vrot.lane.b32.xlu1 %v6273_v8, %s6055_s16 }
 0xc5b   : > { %v4031_v6 = vpop.xlane.xlu1 %4030 }
 0xc5d   : > { %v4028_v9 = vpop.xlane.xlu0 %4027 }
 0xc5e   : > { %5989 = vrcp.f32 %v4028_v9 }
 0xc5f   : > { %v4049_v15 = vpop.permute.xlu1 %4048  ;;  %5991 = vrcp.f32 %v4031_v6 }
 0xc61   : > { %v4051_v4 = vpop.permute.xlu0 %4050 }
 0xc62   : > { %5728 = vmatprep.subr.mxu0 %v4051_v4 }
 0xc63   : > { %v4138_v16 = vpop.permute.xlu1 %4137  ;;  %5729 = vmatpush3.msra.mxu0 %v4051_v4 }
 0xc64   : > { %5730 = vmatprep.subr.mxu0 %v4049_v15 }
 0xc65   : > { %5731 = vmatpush3.msra.mxu0 %v4049_v15  ;;  %v4225_v8 = vpop.permute.xlu0 %4224 }
 0xc66   : > { %5733 = vmatmul.mubr.msk.f32.vlgmr.msra.gmra.mxu0 %vm1137_vm2, %v4041_v5  ;;  %5735 = vmatprep.subr.mxu0 %v4138_v16 }
 0xc67   : > { %5742 = vmatprep.subr.mxu1 %v4225_v8  ;;  %v4136_v18 = vpop.permute.xlu1 %4135  ;;  %5736 = vmatpush3.msra.mxu0 %v4138_v16 }
 0xc68   : > { %5739 = vmatprep.mubr.msk.f32.mxu0 %vm1137_vm2, %v4042_v49  ;;  %5743 = vmatpush3.msra.mxu1 %v4225_v8  ;;  %v6034_v8 = vld [vmem:[%s6147_s18 + $0x20] sm:$0xff] }
 0xc69   : > { %5737 = vmatprep.subr.mxu0 %v4136_v18 }
 0xc6a   : > { %5738 = vmatpush3.msra.mxu0 %v4136_v18 }
 0xc6b   : > { %v5990_v17 = vpop.eup %5989  ;;  %5740 = vmatmul.mubr.msk.f32.vlgmr.msra.gmra.mxu0 %vm1137_vm2, %v4043_v41  ;;  %v4223_v38 = vpop.permute.xlu1 %4222 }
 0xc6c   : > { %5744 = vmatprep.subr.mxu1 %v4223_v38  ;;  %v4046_v19 = vmul.f32 %v5990_v17, %v6933_v29  ;;  %v5992_v52 = vpop.eup %5991  ;;  %v6035_v17 = vld [vmem:[%s6147_s18 + $0x38] sm:$0xff] }
 0xc6d   : > { %5745 = vmatpush3.msra.mxu1 %v4223_v38  ;;  %v4047_v47 = vmul.f32 %v5992_v52, %v6929_v43  ;;  %v6029_v43 = vld [vmem:[%s6147_s18 + $0x8] sm:$0xff] }
 0xc6e   : > { %5753 = vmatprep.mubr.msk.f32.mxu0 %vm1137_vm2, %v4046_v19  ;;  %5756 = vmatprep.subr.mxu1 %v755_v42 }
 0xc96   : > { %v4022_v22 = vpop.xlane.xlu0 %4021 }
 0xc97   : > { %5993 = vrcp.f32 %v4022_v22 }
 0xc9a   : > { %v4312_v24 = vpop.permute.xlu0 %4311 }
 0xc9b   : > { %5749 = vmatprep.subr.mxu0 %v4312_v24 }
 0xc9c   : > { %v4025_v51 = vpop.xlane.xlu1 %4024  ;;  %5750 = vmatpush3.msra.mxu0 %v4312_v24 }
 0xc9d   : > { %5995 = vrcp.f32 %v4025_v51 }
 0xca0   : > { %v4310_v61 = vpop.permute.xlu1 %4309 }
 0xca1   : > { %5751 = vmatprep.subr.mxu0 %v4310_v61 }
 0xca2   : > { %5752 = vmatpush3.msra.mxu0 %v4310_v61 }
 0xca3   : > { %5754 = vmatmul.mubr.msk.f32.vlgmr.msra.gmra.mxu0 %vm1137_vm2, %v4047_v47 }
 0xca4   : > { %v5994_v48 = vpop.eup %5993 }
 0xca5   : > { %v4044_v10 = vmul.f32 %v5994_v48, %v5980_v45  ;;  %v6031_v45 = vld [vmem:[%s6147_s18 + $0x18] sm:$0xff] }
 0xca7   : > { %5746 = vmatprep.mubr.msk.f32.mxu1 %vm1137_vm2, %v4044_v10 }
 0xcaa   : > { %v5996_v25 = vpop.eup %5995 }
 0xcab   : > { %v4045_v26 = vmul.f32 %v5996_v25, %v6945_v59 }
 0xcad   : > { %5747 = vmatmul.mubr.msk.f32.vlgmr.msra.gmra.mxu1 %vm1137_vm2, %v4045_v26 }
 0xcae   : > { %5757 = vmatpush3.msra.mxu1 %v755_v42 }
 0xd26   : > { %v5734_v23 = vpop.f32.mrf.mxu0 }
 0xd28   : > { %v4126_v55 = vpop.f32.mrf.mxu0 }
 0xd29   : > { %5758 = vmatprep.mubr.msk.f32.mxu1 %vm778_vm1, %v4126_v55 }
 0xd2a   : > { %5759 = vmatmul.mubr.msk.f32.vlgmr.msra.gmra.mxu1 %vm778_vm1, %v5734_v23 }
 0xd2b   : > { %v5741_v31 = vpop.f32.mrf.mxu0 }
 0xd2d   : > { %v4213_v33 = vpop.f32.mrf.mxu0 }
 0xd2e   : > { %5761 = vmatprep.mubr.msk.f32.mxu1 %vm778_vm1, %v4213_v33 }
 0xd2f   : > { %5762 = vmatmul.mubr.msk.f32.gmra.mxu1 %vm778_vm1, %v5741_v31 }
 0xd63   : > { %v5755_v30 = vpop.f32.mrf.mxu0 }
 0xd65   : > { %v4387_v54 = vpop.f32.mrf.mxu0 }
 0xd6d   : > { %v5748_v34 = vpop.f32.mrf.mxu1 }
 0xd6f   : > { %v4300_v36 = vpop.f32.mrf.mxu1 }
 0xd70   : > { %5764 = vmatprep.mubr.msk.f32.mxu1 %vm778_vm1, %v4300_v36 }
 0xd71   : > { %5765 = vmatmul.mubr.msk.f32.gmra.mxu1 %vm778_vm1, %v5748_v34 }
 0xd72   : > { %5767 = vmatprep.mubr.msk.f32.mxu1 %vm778_vm1, %v4387_v54 }
 0xd75   : > { %5768 = vmatmul.mubr.msk.f32.gmra.mxu1 %vm778_vm1, %v5755_v30 }
 0xdea   : > { %v5760_v40 = vpop.f32.mrf.mxu1 }
 0xdeb   : > { %v4526_v0 = vadd.f32 %v5760_v40, %v6872_v46 }
 0xdec   : > { %v4486_v35 = vpop.f32.mrf.mxu1 }
 0xded   : > { %v4534_v3 = vadd.f32 %v6029_v43, %v4526_v0  ;;  %v4525_v29 = vadd.f32 %v4486_v35, %v6876_v27 }
 0xdef   : > { %v6981_v44 = vadd.f32 %v5241_v39, %v4534_v3  ;;  %v4533_v7 = vadd.f32 %v6030_v28, %v4525_v29  ;;  %v5763_v56 = vpop.f32.mrf.mxu1  ;;  %v4693_v3 = vld [vmem:[%s7196_s10 + $0x18] sm:$0xff]  ;;  %v4692_v29 = vld [vmem:[%s7196_s10 + $0x10] sm:$0xff]  ;;  %v4691_v28 = vld [vmem:[%s7196_s10 + $0x8] sm:$0xff] }
 0xdf0   : > { %v4528_v53 = vadd.f32 %v5763_v56, %v6880_v32  ;;  %5770 = vmatprep.subr.mxu0 %v4693_v3 }
 0xdf1   : > { %v6985_v21 = vadd.f32 %v5241_v39, %v4533_v7  ;;  %v4496_v46 = vpop.f32.mrf.mxu1  ;;  %v4559_v50 = vsel %vm476_vm0, %v6981_v44, 0.0  ;;  %5771 = vmatpush3.msra.mxu0 %v4693_v3  ;;  %v4690_v7 = vld [vmem:[%s7196_s10] sm:$0xff] }
 0xdf2   : > { %v4536_v2 = vadd.f32 %v6031_v45, %v4528_v53  ;;  %v4527_v59 = vadd.f32 %v4496_v46, %v6882_v58  ;;  %4560 = vadd.xlane.f32.xlu1 %v4559_v50  ;;  %5772 = vmatprep.subr.mxu0 %v4692_v29 }
 0xdf3   : > { %v4556_v27 = vsel %vm476_vm0, %v6985_v21, 0.0  ;;  %5773 = vmatpush3.msra.mxu0 %v4692_v29 }
 0xdf4   : > { %v6993_v57 = vadd.f32 %v5241_v39, %v4536_v2  ;;  %v4535_v32 = vadd.f32 %v6032_v62, %v4527_v59  ;;  %4557 = vadd.xlane.f32.xlu0 %v4556_v27  ;;  %5774 = vmatprep.subr.mxu0 %v4691_v28 }
 0xdf5   : > { %5775 = vmatpush3.msra.mxu0 %v4691_v28 }
 0xdf6   : > { %v6996_v63 = vadd.f32 %v5241_v39, %v4535_v32  ;;  %v4565_v1 = vsel %vm476_vm0, %v6993_v57, 0.0  ;;  %5776 = vmatprep.subr.mxu0 %v4690_v7 }
 0xdf7   : > { %5777 = vmatpush3.msra.mxu0 %v4690_v7 }
 0xdf8   : > { %4566 = vadd.xlane.f32.xlu0 %v4565_v1  ;;  %v4562_v58 = vsel %vm476_vm0, %v6996_v63, 0.0 }
 0xdfc   : > { %4563 = vadd.xlane.f32.xlu0 %v4562_v58 }
 0xe31   : > { %v5766_v6 = vpop.f32.mrf.mxu1 }
 0xe32   : > { %v4530_v9 = vadd.f32 %v5766_v6, %v6888_v37 }
 0xe33   : > { %v4506_v15 = vpop.f32.mrf.mxu1 }
 0xe34   : > { %v4538_v4 = vadd.f32 %v6033_v11, %v4530_v9  ;;  %v4529_v20 = vadd.f32 %v4506_v15, %v6892_v60  ;;  %v6036_v60 = vld [vmem:[%s6147_s18 + $0x30] sm:$0xff] }
 0xe35   : > { %v5769_v16 = vpop.f32.mrf.mxu1 }
 0xe36   : > { %v7005_v5 = vadd.f32 %v5241_v39, %v4538_v4  ;;  %v4537_v14 = vadd.f32 %v6034_v8, %v4529_v20  ;;  %v4532_v49 = vadd.f32 %v5769_v16, %v6896_v12 }
 0xe37   : > { %v4516_v18 = vpop.f32.mrf.mxu1 }
 0xe38   : > { %v7009_v41 = vadd.f32 %v5241_v39, %v4537_v14  ;;  %v4540_v38 = vadd.f32 %v6035_v17, %v4532_v49  ;;  %v4531_v37 = vadd.f32 %v4516_v18, %v6901_v13  ;;  %v4571_v19 = vsel %vm476_vm0, %v7005_v5, 0.0  ;;  %v4885_v14 = vld [vmem:[%s7198_s12 + $0x78] sm:$0xff]  ;;  %v4884_v49 = vld [vmem:[%s7198_s12 + $0x70] sm:$0xff]  ;;  %v4883_v18 = vld [vmem:[%s7198_s12 + $0x68] sm:$0xff] }
 0xe39   : > { %4572 = vadd.xlane.f32.xlu1 %v4571_v19  ;;  %5790 = vmatprep.subr.mxu1 %v4885_v14 }
 0xe3a   : > { %v7015_v22 = vadd.f32 %v5241_v39, %v4540_v38  ;;  %v4539_v24 = vadd.f32 %v6036_v60, %v4531_v37  ;;  %v4568_v51 = vsel %vm476_vm0, %v7009_v41, 0.0  ;;  %5791 = vmatpush3.msra.mxu1 %v4885_v14 }
 0xe3b   : > { %4569 = vadd.xlane.f32.xlu0 %v4568_v51  ;;  %5792 = vmatprep.subr.mxu1 %v4884_v49 }
 0xe3c   : > { %v7020_v12 = vadd.f32 %v5241_v39, %v4539_v24  ;;  %v4577_v52 = vsel %vm476_vm0, %v7015_v22, 0.0  ;;  %5793 = vmatpush3.msra.mxu1 %v4884_v49 }
 0xe3d   : > { %4578 = vadd.xlane.f32.xlu1 %v4577_v52  ;;  %5794 = vmatprep.subr.mxu1 %v4883_v18 }
 0xe3e   : > { %v4574_v13 = vsel %vm476_vm0, %v7020_v12, 0.0  ;;  %5795 = vmatpush3.msra.mxu1 %v4883_v18  ;;  %v4881_v18 = vld [vmem:[%s7198_s12 + $0x58] sm:$0xff] }
 0xe3f   : > { %4575 = vadd.xlane.f32.xlu0 %v4574_v13 }
 0xe7b   : > { %v4561_v61 = vpop.xlane.xlu1 %4560 }
 0xe7c   : > { %v4581_v47 = vmul.f32 0.03125, %v4561_v61 }
 0xe7d   : > { %v4558_v48 = vpop.xlane.xlu0 %4557 }
 0xe7e   : > { %v7027_v10 = vsub.f32 %v6981_v44, %v4581_v47  ;;  %v4580_v42 = vmul.f32 0.03125, %v4558_v48 }
 0xe80   : > { %v7030_v25 = vsub.f32 %v6985_v21, %v4580_v42  ;;  %v4597_v26 = vmul.f32 %v7027_v10, %v7027_v10 }
 0xe81   : > { %v4567_v23 = vpop.xlane.xlu0 %4566 }
 0xe82   : > { %v4583_v55 = vmul.f32 0.03125, %v4567_v23  ;;  %v4607_v31 = vsel %vm476_vm0, %v4597_v26, 0.0  ;;  %v4596_v33 = vmul.f32 %v7030_v25, %v7030_v25  ;;  %v5242_v23 = vld [vmem:[%s7194_s8] ss:$0 sm:$0xff] }
 0xe83   : > { %4608 = vadd.xlane.f32.xlu1 %v4607_v31 }
 0xe84   : > { %v7038_v30 = vsub.f32 %v6993_v57, %v4583_v55  ;;  %v4604_v34 = vsel %vm476_vm0, %v4596_v33, 0.0 }
 0xe85   : > { %4605 = vadd.xlane.f32.xlu0 %v4604_v34  ;;  %v4564_v36 = vpop.xlane.xlu0 %4563 }
 0xe86   : > { %v4582_v54 = vmul.f32 0.03125, %v4564_v36  ;;  %v4599_v40 = vmul.f32 %v7038_v30, %v7038_v30  ;;  %v5243_v36 = vld [vmem:[%s7195_s9] ss:$0 sm:$0xff] }
 0xe88   : > { %v7044_v0 = vsub.f32 %v6996_v63, %v4582_v54  ;;  %v4613_v39 = vsel %vm476_vm0, %v4599_v40, 0.0 }
 0xe89   : > { %4614 = vadd.xlane.f32.xlu1 %v4613_v39 }
 0xe8a   : > { %v4598_v35 = vmul.f32 %v7044_v0, %v7044_v0 }
 0xe8c   : > { %v4610_v43 = vsel %vm476_vm0, %v4598_v35, 0.0 }
 0xe8d   : > { %4611 = vadd.xlane.f32.xlu0 %v4610_v43 }
 0xec2   : > { %v4573_v56 = vpop.xlane.xlu1 %4572 }
 0xec3   : > { %v4585_v53 = vmul.f32 0.03125, %v4573_v56 }
 0xec4   : > { %v4570_v46 = vpop.xlane.xlu0 %4569 }
 0xec5   : > { %v7063_v50 = vsub.f32 %v7005_v5, %v4585_v53  ;;  %v4584_v45 = vmul.f32 0.03125, %v4570_v46 }
 0xec6   : > { %v4579_v2 = vpop.xlane.xlu1 %4578 }
 0xec7   : > { %v7066_v59 = vsub.f32 %v7009_v41, %v4584_v45  ;;  %v4587_v27 = vmul.f32 0.03125, %v4579_v2  ;;  %v4601_v62 = vmul.f32 %v7063_v50, %v7063_v50 }
 0xec8   : > { %v4576_v32 = vpop.xlane.xlu0 %4575 }
 0xec9   : > { %v7071_v1 = vsub.f32 %v7015_v22, %v4587_v27  ;;  %v4586_v58 = vmul.f32 0.03125, %v4576_v32  ;;  %v4619_v6 = vsel %vm476_vm0, %v4601_v62, 0.0  ;;  %v4600_v9 = vmul.f32 %v7066_v59, %v7066_v59 }
 0xeca   : > { %4620 = vadd.xlane.f32.xlu1 %v4619_v6 }
 0xecb   : > { %v7077_v15 = vsub.f32 %v7020_v12, %v4586_v58  ;;  %v4616_v11 = vsel %vm476_vm0, %v4600_v9, 0.0  ;;  %v4603_v4 = vmul.f32 %v7071_v1, %v7071_v1 }
 0xecc   : > { %4617 = vadd.xlane.f32.xlu0 %v4616_v11 }
 0xecd   : > { %v4625_v20 = vsel %vm476_vm0, %v4603_v4, 0.0  ;;  %v4602_v16 = vmul.f32 %v7077_v15, %v7077_v15 }
 0xece   : > { %4626 = vadd.xlane.f32.xlu1 %v4625_v20  ;;  %v4882_v20 = vld [vmem:[%s7198_s12 + $0x60] sm:$0xff] }
 0xecf   : > { %v4622_v8 = vsel %vm476_vm0, %v4602_v16, 0.0  ;;  %5796 = vmatprep.subr.mxu1 %v4882_v20 }
 0xed0   : > { %4623 = vadd.xlane.f32.xlu0 %v4622_v8  ;;  %5797 = vmatpush3.msra.mxu1 %v4882_v20 }
 0xed1   : > { %5798 = vmatprep.subr.mxu1 %v4881_v18 }
 0xed2   : > { %5799 = vmatpush3.msra.mxu1 %v4881_v18 }
 0xf0c   : > { %v4609_v17 = vpop.xlane.xlu1 %4608 }
 0xf0d   : > { %v4629_v38 = vmul.f32 0.03125, %v4609_v17 }
 0xf0e   : > { %v4606_v37 = vpop.xlane.xlu0 %4605 }
 0xf0f   : > { %v4637_v19 = vadd.f32 1e-05, %v4629_v38  ;;  %v4628_v60 = vmul.f32 0.03125, %v4606_v37  ;;  %v4880_v38 = vld [vmem:[%s7198_s12 + $0x50] sm:$0xff] }
 0xf10   : > { %5800 = vmatprep.subr.mxu1 %v4880_v38 }
 0xf11   : > { %5997 = vrsqrt.f32 %v4637_v19  ;;  %v4636_v24 = vadd.f32 1e-05, %v4628_v60  ;;  %5801 = vmatpush3.msra.mxu1 %v4880_v38  ;;  %v4879_v60 = vld [vmem:[%s7198_s12 + $0x48] sm:$0xff] }
 0xf12   : > { %v4615_v51 = vpop.xlane.xlu1 %4614  ;;  %5802 = vmatprep.subr.mxu1 %v4879_v60 }
 0xf13   : > { %5999 = vrsqrt.f32 %v4636_v24  ;;  %v4631_v52 = vmul.f32 0.03125, %v4615_v51  ;;  %5803 = vmatpush3.msra.mxu1 %v4879_v60  ;;  %v4878_v24 = vld [vmem:[%s7198_s12 + $0x40] sm:$0xff] }
 0xf14   : > { %5804 = vmatprep.subr.mxu1 %v4878_v24 }
 0xf15   : > { %v4639_v13 = vadd.f32 1e-05, %v4631_v52  ;;  %5805 = vmatpush3.msra.mxu1 %v4878_v24  ;;  %v4877_v52 = vld [vmem:[%s7198_s12 + $0x38] sm:$0xff] }
 0xf16   : > { %v4612_v61 = vpop.xlane.xlu0 %4611  ;;  %5806 = vmatprep.subr.mxu1 %v4877_v52 }
 0xf17   : > { %6001 = vrsqrt.f32 %v4639_v13  ;;  %v4630_v47 = vmul.f32 0.03125, %v4612_v61  ;;  %5807 = vmatpush3.msra.mxu1 %v4877_v52  ;;  %v4876_v13 = vld [vmem:[%s7198_s12 + $0x30] sm:$0xff]  ;;  %v4875_v61 = vld [vmem:[%s7198_s12 + $0x28] sm:$0xff] }
 0xf18   : > { %5808 = vmatprep.subr.mxu1 %v4876_v13 }
 0xf19   : > { %v4638_v48 = vadd.f32 1e-05, %v4630_v47  ;;  %5809 = vmatpush3.msra.mxu1 %v4876_v13  ;;  %v4874_v47 = vld [vmem:[%s7198_s12 + $0x20] sm:$0xff] }
 0xf1a   : > { %5810 = vmatprep.subr.mxu1 %v4875_v61 }
 0xf1b   : > { %6003 = vrsqrt.f32 %v4638_v48  ;;  %5811 = vmatpush3.msra.mxu1 %v4875_v61  ;;  %v4873_v48 = vld [vmem:[%s7198_s12 + $0x18] sm:$0xff] }
 0xf1c   : > { %5812 = vmatprep.subr.mxu1 %v4874_v47 }
 0xf1d   : > { %5813 = vmatpush3.msra.mxu1 %v4874_v47 }
 0xf1e   : > { %v5998_v42 = vpop.eup %5997  ;;  %5814 = vmatprep.subr.mxu1 %v4873_v48 }
 0xf1f   : > { %v4653_v26 = vmul.f32 %v5998_v42, %v7027_v10  ;;  %5815 = vmatpush3.msra.mxu1 %v4873_v48  ;;  %v4872_v42 = vld [vmem:[%s7198_s12 + $0x10] sm:$0xff] }
 0xf20   : > { %v6000_v55 = vpop.eup %5999  ;;  %5816 = vmatprep.subr.mxu1 %v4872_v42 }
 0xf21   : > { %v4652_v31 = vmul.f32 %v6000_v55, %v7030_v25  ;;  %v4668_v33 = vmul.f32 %v5242_v23, %v4653_v26  ;;  %v4871_v26 = vld [vmem:[%s7198_s12 + $0x8] sm:$0xff]  ;;  %5817 = vmatpush3.msra.mxu1 %v4872_v42  ;;  %v5244_v55 = vld [vmem:[%s7197_s11] ss:$0 sm:$0xff] }
 0xf22   : > { %5818 = vmatprep.subr.mxu1 %v4871_v26 }
 0xf23   : > { %v4667_v34 = vmul.f32 %v5242_v23, %v4652_v31  ;;  %v4683_v39 = vadd.f32 %v5243_v36, %v4668_v33  ;;  %5819 = vmatpush3.msra.mxu1 %v4871_v26 }
 0xf24   : > { %v6002_v54 = vpop.eup %6001 }
 0xf25   : > { %v4682_v40 = vadd.f32 %v5243_v36, %v4667_v34  ;;  %v4655_v35 = vmul.f32 %v6002_v54, %v7038_v30 }
 0xf27   : > { %5778 = vmatprep.mubr.msk.f32.mxu0 %vm476_vm0, %v4682_v40  ;;  %v4670_v3 = vmul.f32 %v5242_v23, %v4655_v35 }
 0xf28   : > { %v6004_v10 = vpop.eup %6003  ;;  %5779 = vmatmul.mubr.msk.f32.vlgmr.msra.gmra.mxu0 %vm476_vm0, %v4683_v39 }
 0xf29   : > { %v4654_v43 = vmul.f32 %v6004_v10, %v7044_v0  ;;  %v4685_v28 = vadd.f32 %v5243_v36, %v4670_v3 }
 0xf2b   : > { %v4669_v25 = vmul.f32 %v5242_v23, %v4654_v43 }
 0xf2d   : > { %v4684_v29 = vadd.f32 %v5243_v36, %v4669_v25 }
 0xf2f   : > { %5781 = vmatprep.mubr.msk.f32.mxu0 %vm476_vm0, %v4684_v29 }
 0xf30   : > { %5782 = vmatmul.mubr.msk.f32.gmra.mxu0 %vm476_vm0, %v4685_v28 }
 0xf53   : > { %v4621_v7 = vpop.xlane.xlu1 %4620 }
 0xf54   : > { %v4633_v56 = vmul.f32 0.03125, %v4621_v7 }
 0xf55   : > { %v4618_v53 = vpop.xlane.xlu0 %4617 }
 0xf56   : > { %v4641_v46 = vadd.f32 1e-05, %v4633_v56  ;;  %v4632_v30 = vmul.f32 0.03125, %v4618_v53 }
 0xf57   : > { %v4627_v45 = vpop.xlane.xlu1 %4626 }
 0xf58   : > { %6005 = vrsqrt.f32 %v4641_v46  ;;  %v4640_v2 = vadd.f32 1e-05, %v4632_v30  ;;  %v4635_v27 = vmul.f32 0.03125, %v4627_v45 }
 0xf59   : > { %v4624_v62 = vpop.xlane.xlu0 %4623 }
 0xf5a   : > { %6007 = vrsqrt.f32 %v4640_v2  ;;  %v4643_v0 = vadd.f32 1e-05, %v4635_v27  ;;  %v4634_v32 = vmul.f32 0.03125, %v4624_v62 }
 0xf5c   : > { %6009 = vrsqrt.f32 %v4643_v0  ;;  %v4642_v58 = vadd.f32 1e-05, %v4634_v32 }
 0xf5e   : > { %6011 = vrsqrt.f32 %v4642_v58 }
 0xf65   : > { %v6006_v6 = vpop.eup %6005 }
 0xf66   : > { %v4657_v9 = vmul.f32 %v6006_v6, %v7063_v50 }
 0xf67   : > { %v6008_v11 = vpop.eup %6007 }
 0xf68   : > { %v4656_v4 = vmul.f32 %v6008_v11, %v7066_v59  ;;  %v4672_v8 = vmul.f32 %v5242_v23, %v4657_v9 }
 0xf69   : > { %v6010_v16 = vpop.eup %6009 }
 0xf6a   : > { %v4671_v14 = vmul.f32 %v5242_v23, %v4656_v4  ;;  %v4659_v49 = vmul.f32 %v6010_v16, %v7071_v1  ;;  %v4687_v37 = vadd.f32 %v5243_v36, %v4672_v8 }
 0xf6b   : > { %v6012_v17 = vpop.eup %6011 }
 0xf6c   : > { %v4686_v50 = vadd.f32 %v5243_v36, %v4671_v14  ;;  %v4658_v59 = vmul.f32 %v6012_v17, %v7077_v15  ;;  %v4674_v19 = vmul.f32 %v5242_v23, %v4659_v49 }
 0xf6e   : > { %5784 = vmatprep.mubr.msk.f32.mxu0 %vm476_vm0, %v4686_v50  ;;  %v4673_v1 = vmul.f32 %v5242_v23, %v4658_v59  ;;  %v4689_v51 = vadd.f32 %v5243_v36, %v4674_v19  ;;  %v4870_v23 = vld [vmem:[%s7198_s12] sm:$0xff] }
 0xf6f   : > { %5785 = vmatmul.mubr.msk.f32.gmra.mxu0 %vm476_vm0, %v4687_v37  ;;  %5820 = vmatprep.subr.mxu1 %v4870_v23 }
 0xf70   : > { %v4688_v15 = vadd.f32 %v5243_v36, %v4673_v1  ;;  %5821 = vmatpush3.msra.mxu1 %v4870_v23 }
 0xf72   : > { %5787 = vmatprep.mubr.msk.f32.mxu0 %vm476_vm0, %v4688_v15 }
 0xf73   : > { %5788 = vmatmul.mubr.msk.f32.gmra.mxu0 %vm476_vm0, %v4689_v51 }
 0xfe8   : > { %v5780_v31 = vpop.f32.mrf.mxu0 }
 0xfe9   : > { %v4797_v33 = vadd.f32 %v5780_v31, %v5244_v55  ;;  %v5253_v31 = vld [vmem:[%s7199_s13] ss:$0 sm:$0xff] }
 0xfea   : > { %v4791_v34 = vpop.f32.mrf.mxu0 }
 0xfeb   : > { %v4839_v36 = vmul.f32 0.70710677, %v4797_v33  ;;  %v4792_v54 = vadd.f32 %v5244_v55, %v4791_v34  ;;  %v4831_v46 = vmul.f32 0.5, %v4797_v33 }
 0xfed   : > { %6013 = verf.f32 %v4839_v36  ;;  %v4838_v40 = vmul.f32 0.70710677, %v4792_v54  ;;  %v4830_v56 = vmul.f32 0.5, %v4792_v54 }
 0xfef   : > { %6015 = verf.f32 %v4838_v40 }
 0xff0   : > { %v5783_v39 = vpop.f32.mrf.mxu0 }
 0xff1   : > { %v4807_v35 = vadd.f32 %v5783_v39, %v5244_v55 }
 0xff2   : > { %v4801_v10 = vpop.f32.mrf.mxu0 }
 0xff3   : > { %v4841_v43 = vmul.f32 0.70710677, %v4807_v35  ;;  %v4802_v3 = vadd.f32 %v5244_v55, %v4801_v10  ;;  %v4833_v58 = vmul.f32 0.5, %v4807_v35 }
 0xff5   : > { %6017 = verf.f32 %v4841_v43  ;;  %v4840_v25 = vmul.f32 0.70710677, %v4802_v3  ;;  %v4832_v0 = vmul.f32 0.5, %v4802_v3 }
 0xff7   : > { %6019 = verf.f32 %v4840_v25 }
 0xffa   : > { %v6014_v29 = vpop.eup %6013 }
 0xffb   : > { %v4855_v7 = vadd.f32 1.0, %v6014_v29 }
 0xffc   : > { %v6016_v28 = vpop.eup %6015 }
 0xffd   : > { %v4854_v53 = vadd.f32 1.0, %v6016_v28  ;;  %v4863_v45 = vmul.f32 %v4855_v7, %v4831_v46 }
 0xfff   : > { %v4862_v30 = vmul.f32 %v4854_v53, %v4830_v56 }
0x1001   : > { %5822 = vmatprep.mubr.f32.mxu1 %v4862_v30 }
0x1002   : > { %v6018_v2 = vpop.eup %6017  ;;  %5823 = vmatmul.mubr.f32.vlgmr.msra.gmra.mxu1 %v4863_v45 }
0x1003   : > { %v4857_v62 = vadd.f32 1.0, %v6018_v2 }
0x1004   : > { %v6020_v27 = vpop.eup %6019 }
0x1005   : > { %v4856_v32 = vadd.f32 1.0, %v6020_v27  ;;  %v4865_v9 = vmul.f32 %v4857_v62, %v4833_v58 }
0x1007   : > { %v4864_v6 = vmul.f32 %v4856_v32, %v4832_v0 }
0x1009   : > { %5825 = vmatprep.mubr.f32.mxu1 %v4864_v6 }
0x100a   : > { %5826 = vmatmul.mubr.f32.gmra.mxu1 %v4865_v9 }
0x102f   : > { %v5786_v11 = vpop.f32.mrf.mxu0 }
0x1030   : > { %v4817_v4 = vadd.f32 %v5786_v11, %v5244_v55 }
0x1031   : > { %v4811_v20 = vpop.f32.mrf.mxu0 }
0x1032   : > { %v4843_v16 = vmul.f32 0.70710677, %v4817_v4  ;;  %v4812_v8 = vadd.f32 %v5244_v55, %v4811_v20  ;;  %v4835_v51 = vmul.f32 0.5, %v4817_v4 }
0x1033   : > { %v5789_v14 = vpop.f32.mrf.mxu0 }
0x1034   : > { %6021 = verf.f32 %v4843_v16  ;;  %v4842_v49 = vmul.f32 0.70710677, %v4812_v8  ;;  %v4827_v18 = vadd.f32 %v5789_v14, %v5244_v55  ;;  %v4834_v60 = vmul.f32 0.5, %v4812_v8 }
0x1035   : > { %v4821_v17 = vpop.f32.mrf.mxu0 }
0x1036   : > { %6023 = verf.f32 %v4842_v49  ;;  %v4845_v50 = vmul.f32 0.70710677, %v4827_v18  ;;  %v4822_v59 = vadd.f32 %v5244_v55, %v4821_v17  ;;  %v4837_v26 = vmul.f32 0.5, %v4827_v18 }
0x1038   : > { %6025 = verf.f32 %v4845_v50  ;;  %v4844_v38 = vmul.f32 0.70710677, %v4822_v59  ;;  %v4836_v48 = vmul.f32 0.5, %v4822_v59 }
0x103a   : > { %6027 = verf.f32 %v4844_v38 }
0x1041   : > { %v6022_v37 = vpop.eup %6021 }
0x1042   : > { %v4859_v1 = vadd.f32 1.0, %v6022_v37 }
0x1043   : > { %v6024_v19 = vpop.eup %6023 }
0x1044   : > { %v4858_v15 = vadd.f32 1.0, %v6024_v19  ;;  %v4867_v61 = vmul.f32 %v4859_v1, %v4835_v51 }
0x1045   : > { %v6026_v24 = vpop.eup %6025 }
0x1046   : > { %v4866_v52 = vmul.f32 %v4858_v15, %v4834_v60  ;;  %v4861_v47 = vadd.f32 1.0, %v6026_v24 }
0x1047   : > { %v6028_v13 = vpop.eup %6027 }
0x1048   : > { %5828 = vmatprep.mubr.f32.mxu1 %v4866_v52  ;;  %v4860_v42 = vadd.f32 1.0, %v6028_v13  ;;  %v4869_v55 = vmul.f32 %v4861_v47, %v4837_v26 }
0x1049   : > { %5829 = vmatmul.mubr.f32.gmra.mxu1 %v4867_v61 }
0x104a   : > { %v4868_v23 = vmul.f32 %v4860_v42, %v4836_v48 }
0x104c   : > { %5831 = vmatprep.mubr.f32.mxu1 %v4868_v23 }
0x104d   : > { %5832 = vmatmul.mubr.f32.gmra.mxu1 %v4869_v55 }
0x10c2   : > { %v5824_v33 = vpop.f32.mrf.mxu1 }
0x10c3   : > { %v4965_v34 = vadd.f32 %v5824_v33, %v5253_v31 }
0x10c4   : > { %v4959_v36 = vpop.f32.mrf.mxu1 }
0x10c5   : > { %v4999_v54 = vadd.f32 %v4965_v34, %v6981_v44  ;;  %v4960_v40 = vadd.f32 %v5253_v31, %v4959_v36 }
0x10c7   : > { %5007 = vst.msk [vmem:[%s467_s20 + $0x8] sm:$0xff] %vm476_vm0, %v4999_v54  ;;  %v4998_v39 = vadd.f32 %v4960_v40, %v6985_v21 }
0x10c9   : > { %5006 = vst.msk [vmem:[%s467_s20] sm:$0xff] %vm476_vm0, %v4998_v39 }
0x10ca   : > { %v5827_v35 = vpop.f32.mrf.mxu1 }
0x10cb   : > { %v4975_v10 = vadd.f32 %v5827_v35, %v5253_v31 }
0x10cc   : > { %v4969_v43 = vpop.f32.mrf.mxu1 }
0x10cd   : > { %v5001_v3 = vadd.f32 %v4975_v10, %v6993_v57  ;;  %v4970_v25 = vadd.f32 %v5253_v31, %v4969_v43 }
0x10cf   : > { %5009 = vst.msk [vmem:[%s467_s20 + $0x18] sm:$0xff] %vm476_vm0, %v5001_v3  ;;  %v5000_v29 = vadd.f32 %v4970_v25, %v6996_v63 }
0x10d1   : > { %5008 = vst.msk [vmem:[%s467_s20 + $0x10] sm:$0xff] %vm476_vm0, %v5000_v29 }
0x1109   : > { %v5830_v44 = vpop.f32.mrf.mxu1 }
0x110a   : > { %v4985_v28 = vadd.f32 %v5830_v44, %v5253_v31 }
0x110b   : > { %v4979_v7 = vpop.f32.mrf.mxu1 }
0x110c   : > { %v5003_v56 = vadd.f32 %v4985_v28, %v7005_v5  ;;  %v4980_v21 = vadd.f32 %v5253_v31, %v4979_v7 }
0x110d   : > { %v5833_v53 = vpop.f32.mrf.mxu1 }
0x110e   : > { %5011 = vst.msk [vmem:[%s467_s20 + $0x28] sm:$0xff] %vm476_vm0, %v5003_v56  ;;  %v5002_v46 = vadd.f32 %v4980_v21, %v7009_v41  ;;  %v4995_v30 = vadd.f32 %v5833_v53, %v5253_v31 }
0x110f   : > { %v4989_v57 = vpop.f32.mrf.mxu1 }
0x1110   : > { %5010 = vst.msk [vmem:[%s467_s20 + $0x20] sm:$0xff] %vm476_vm0, %v5002_v46  ;;  %v5005_v45 = vadd.f32 %v4995_v30, %v7015_v22  ;;  %v4990_v63 = vadd.f32 %v5253_v31, %v4989_v57 }
0x1112   : > { %5013 = vst.msk [vmem:[%s467_s20 + $0x38] sm:$0xff] %vm476_vm0, %v5005_v45  ;;  %v5004_v2 = vadd.f32 %v4990_v63, %v7020_v12 }
0x1114   : > { %5012 = vst.msk [vmem:[%s467_s20 + $0x30] sm:$0xff] %vm476_vm0, %v5004_v2 }
0x1115 PF: > { %s24_s29 = sadd.s32 1, %s6043_s29  }
0x1116   : > { %p21_p4 = scmp.ge.s32.totalorder %s24_s29, 4  }
0x1118   :  { %23 = sbr.rel (!%p21_p4) target bundleno = 1 (0x1), region = 109 }

</bundles_post_ra>
